<compile_context>
chip_gen: v7x
topology: tpu7x:2x2x1
jax: 0.10.0
libtpu: 0.0.40
codegen_flags: <defaults>
</compile_context>

<pallas_src>
import jax
import jax.numpy as jnp
from jax.experimental import pallas as pl
from jax.experimental.pallas import tpu as pltpu


def _noise_injector_kernel(f_ref, res_ref, scl_ref,
                           w1_ref, b1_ref, w2_ref, b2_ref, w3_ref, b3_ref,
                           o_ref):
    """One grid step = Bblk batch elements, all N samples at once.

    f_ref  : (Bblk, C, HW)        feature map block (native NCHW, spatial flat)
    res_ref: (Bblk, N, C)         precomputed residual = z @ Wr + br   (f32)
    scl_ref: (Bblk, N, C)         precomputed scale    = z @ Ws + bs   (f32)
    w*_ref : 1x1-conv weights as (C_in, C_out), already in MXU dtype
    b*_ref : biases (1, C_layer), f32
    o_ref  : (Bblk, N, C_out*HW)  channels-first, flattened -> lane-dense store
    """
    bblk, c_in, hw = f_ref.shape
    n = res_ref.shape[1]
    c_out = w3_ref.shape[1]
    mxu_dt = w1_ref.dtype

    # (Bblk, C, HW) -> (Bblk, HW, C): minor-dim flip rides the (idle) XLU.
    f = jnp.transpose(f_ref[...].astype(jnp.float32), (0, 2, 1))     # (Bblk,HW,C)
    res = res_ref[...].astype(jnp.float32)                           # (Bblk,N,C)
    scl = scl_ref[...].astype(jnp.float32)                           # (Bblk,N,C)

    # (feature + residual) * (scale + 1e-5), broadcast over N and spatial.
    # Element-wise math in f32 on the VPU (v5e-safe); the MXU-dtype cast is
    # fused into the same pass so only one copy of the biggest intermediate
    # stays live across the first matmul.
    x = ((f[:, None, :, :] + res[:, :, None, :])
         * (scl[:, :, None, :] + 1e-5)).astype(mxu_dt)         # (Bblk,N,HW,C)
    x = x.reshape(bblk * n * hw, c_in)                          # (M, C)

    # Conv2DSequence: three 1x1 convs == channel matmuls with M = Bblk*N*HW.
    h = jnp.dot(x, w1_ref[...],
                preferred_element_type=jnp.float32) + b1_ref[...]
    h = jnp.maximum(h, 0.0)
    h = jnp.dot(h.astype(mxu_dt), w2_ref[...],
                preferred_element_type=jnp.float32) + b2_ref[...]
    h = jnp.maximum(h, 0.0)
    y = jnp.dot(h.astype(mxu_dt), w3_ref[...],
                preferred_element_type=jnp.float32) + b3_ref[...]   # (M, C_out)

    # One batched (HW, C_out) -> (C_out, HW) flip on the XLU + one lane-dense
    # store (last output dim is C_out*HW).
    y = jnp.transpose(y.reshape(bblk * n, hw, c_out), (0, 2, 1))    # (Bblk*N,C_out,HW)
    o_ref[...] = y.reshape(bblk, n, c_out * hw).astype(o_ref.dtype)


def _per_step_vmem_bytes(bblk, N, C, C_out, HW, io_bytes, mxu_bytes):
    """Rough per-grid-step VMEM footprint (double-buffered I/O + intermediates)."""
    feat = 2 * bblk * C * HW * io_bytes                  # feature tile (x2 bufs)
    vecs = 2 * 2 * bblk * N * C * 4                      # residual + scale
    outb = 2 * bblk * N * C_out * HW * io_bytes          # output tile (x2 bufs)
    wts = 2 * ((2 * C * C + C * C_out) * mxu_bytes + (2 * C + C_out) * 4)
    inter = bblk * N * HW * (3 * C * 4 + C * mxu_bytes + 2 * C_out * 4)
    return feat + vecs + outb + wts + inter


def _pick_bblk(B, N, C, C_out, HW, io_bytes, mxu_bytes, budget_bytes):
    for bblk in range(B, 0, -1):
        if B % bblk == 0 and _per_step_vmem_bytes(
                bblk, N, C, C_out, HW, io_bytes, mxu_bytes) <= budget_bytes:
            return bblk
    return 1


def noise_injector(feature_map, z, params, *, mxu_dtype=jnp.bfloat16):
    """feature_map: (B, C, H, W) NCHW; z: (B, N, D).

    Returns (B*N, C_out, H, W), matching the PyTorch forward.  HBM I/O runs in
    feature_map.dtype; matmul operands are cast to `mxu_dtype` with f32
    accumulation; element-wise math is f32.
    """
    B, C, H, W = feature_map.shape
    _, N, D = z.shape
    HW = H * W
    C_out = params["w3"].shape[1]
    io_dtype = feature_map.dtype
    io_bytes = jnp.dtype(io_dtype).itemsize
    mxu_bytes = jnp.dtype(mxu_dtype).itemsize

    # Hoist the two tiny nn.Linear layers (M = B*N rows) out of the kernel.
    z2 = z.reshape(B * N, D).astype(jnp.float32)
    residual = (z2 @ params["wr"].astype(jnp.float32)
                + params["br"].astype(jnp.float32)).reshape(B, N, C)
    scale = (z2 @ params["ws"].astype(jnp.float32)
             + params["bs"].astype(jnp.float32)).reshape(B, N, C)

    # Native NCHW, just flatten the spatial dims — no HBM transpose.
    f = feature_map.reshape(B, C, HW)

    w1 = params["w1"].astype(mxu_dtype)
    w2 = params["w2"].astype(mxu_dtype)
    w3 = params["w3"].astype(mxu_dtype)
    b1 = params["b1"].astype(jnp.float32)
    b2 = params["b2"].astype(jnp.float32)
    b3 = params["b3"].astype(jnp.float32)

    # Conservative per-step budget (safe even for v5e's small scoped default).
    budget = 20 * (1 << 20)
    Bblk = _pick_bblk(B, N, C, C_out, HW, io_bytes, mxu_bytes, budget)
    est = _per_step_vmem_bytes(Bblk, N, C, C_out, HW, io_bytes, mxu_bytes)
    vmem_limit = int(min(64 * (1 << 20), max(32 * (1 << 20), 2 * est)))
    # TODO(synk): add an HW-blocking parallel grid axis for large H*W.

    flops = 2 * B * N * HW * (C * C + C * C + C * C_out)
    bytes_accessed = int(f.size * io_bytes                     # feature map in
                         + B * N * C_out * HW * io_bytes       # output
                         + (residual.size + scale.size) * 4
                         + (w1.size + w2.size + w3.size) * mxu_bytes
                         + (b1.size + b2.size + b3.size) * 4)

    full2 = lambda b: (0, 0)

    out = pl.pallas_call(
        _noise_injector_kernel,
        out_shape=jax.ShapeDtypeStruct((B, N, C_out * HW), io_dtype),
        grid_spec=pltpu.PrefetchScalarGridSpec(
            num_scalar_prefetch=0,
            grid=(B // Bblk,),
            in_specs=[
                pl.BlockSpec((Bblk, C, HW), lambda b: (b, 0, 0)),  # feature map
                pl.BlockSpec((Bblk, N, C), lambda b: (b, 0, 0)),   # residual
                pl.BlockSpec((Bblk, N, C), lambda b: (b, 0, 0)),   # scale
                pl.BlockSpec((C, C), full2),                       # conv1 weight
                pl.BlockSpec((1, C), full2),                       # conv1 bias
                pl.BlockSpec((C, C), full2),                       # conv2 weight
                pl.BlockSpec((1, C), full2),                       # conv2 bias
                pl.BlockSpec((C, C_out), full2),                   # conv3 weight
                pl.BlockSpec((1, C_out), full2),                   # conv3 bias
            ],
            out_specs=pl.BlockSpec((Bblk, N, C_out * HW),
                                   lambda b: (b, 0, 0)),
        ),
        compiler_params=pltpu.CompilerParams(
            dimension_semantics=("parallel",),
            vmem_limit_bytes=vmem_limit),
        cost_estimate=pl.CostEstimate(
            flops=flops, transcendentals=0, bytes_accessed=bytes_accessed),
    )(f, residual, scale, w1, b1, w2, b2, w3, b3)

    # (B, N, C_out*HW) -> (B*N, C_out, H, W): pure reshape, no transpose.
    return out.reshape(B * N, C_out, H, W)


def init_params(key, z_dim, n_hidden, n_channels_out):
    """Deterministic synthetic init (stand-in for weights_init)."""
    ks = jax.random.split(key, 10)
    s = 0.1
    return {
        # Linear weights stored pre-transposed as (in, out)
        "wr": s * jax.random.normal(ks[0], (z_dim, n_hidden), jnp.float32),
        "br": s * jax.random.normal(ks[1], (1, n_hidden), jnp.float32),
        "ws": s * jax.random.normal(ks[2], (z_dim, n_hidden), jnp.float32),
        "bs": s * jax.random.normal(ks[3], (1, n_hidden), jnp.float32),
        # 1x1 conv weights as (C_in, C_out)
        "w1": s * jax.random.normal(ks[4], (n_hidden, n_hidden), jnp.float32),
        "b1": s * jax.random.normal(ks[5], (1, n_hidden), jnp.float32),
        "w2": s * jax.random.normal(ks[6], (n_hidden, n_hidden), jnp.float32),
        "b2": s * jax.random.normal(ks[7], (1, n_hidden), jnp.float32),
        "w3": s * jax.random.normal(ks[8], (n_hidden, n_channels_out), jnp.float32),
        "b3": s * jax.random.normal(ks[9], (1, n_channels_out), jnp.float32),
    }


def noise_injector_ref(feature_map, z, params, *, mxu_dtype=jnp.float32):
    """Pure-JAX reference mirroring the PyTorch forward.

    `mxu_dtype` casts matmul operands at the same points as the kernel so the
    bf16 fast path can be compared tightly; mxu_dtype=f32 is the exact module.
    """
    B, C, H, W = feature_map.shape
    _, N, D = z.shape
    f = feature_map.astype(jnp.float32)
    f = jnp.repeat(f[:, None], N, axis=1).reshape(B * N, C, H, W)
    z2 = z.reshape(B * N, D).astype(jnp.float32)
    residual = (z2 @ params["wr"] + params["br"]).reshape(B * N, C, 1, 1)
    scale = (z2 @ params["ws"] + params["bs"]).reshape(B * N, C, 1, 1)
    x = (f + residual) * (scale + 1e-5)                  # (BN, C, H, W)
    x = jnp.transpose(x, (0, 2, 3, 1))                   # channels last

    def conv1x1(a, w, b):
        return jnp.dot(a.astype(mxu_dtype), w.astype(mxu_dtype),
                       preferred_element_type=jnp.float32) + b

    h = jnp.maximum(conv1x1(x, params["w1"], params["b1"]), 0.0)
    h = jnp.maximum(conv1x1(h, params["w2"], params["b2"]), 0.0)
    y = conv1x1(h, params["w3"], params["b3"])
    return jnp.transpose(y, (0, 3, 1, 2)).astype(feature_map.dtype)


if __name__ == "__main__":
    B, N = 2, 3
    n_hidden = 32          # == C of the feature map
    z_dim = 8
    n_channels_out = 4
    H = W = 8

    key = jax.random.PRNGKey(0)
    k_f, k_z, k_p = jax.random.split(key, 3)

    feature_map = jax.random.normal(k_f, (B, n_hidden, H, W), jnp.float32)
    z = jax.random.normal(k_z, (B, N, z_dim), jnp.float32)
    params = init_params(k_p, z_dim, n_hidden, n_channels_out)

    # Exact (f32 end-to-end) check against the PyTorch-equivalent math.
    out_f32 = jax.block_until_ready(
        noise_injector(feature_map, z, params, mxu_dtype=jnp.float32))
    ref_f32 = noise_injector_ref(feature_map, z, params, mxu_dtype=jnp.float32)
    assert out_f32.shape == (B * N, n_channels_out, H, W), out_f32.shape
    assert jnp.allclose(out_f32, ref_f32, atol=1e-4, rtol=1e-4), \
        float(jnp.max(jnp.abs(out_f32 - ref_f32)))

    # Fast path: bf16 HBM I/O + bf16 MXU operands, f32 accumulation.
    fm_bf16 = feature_map.astype(jnp.bfloat16)
    out_bf16 = jax.block_until_ready(
        noise_injector(fm_bf16, z, params, mxu_dtype=jnp.bfloat16))
    ref_bf16 = noise_injector_ref(fm_bf16, z, params, mxu_dtype=jnp.bfloat16)
    assert out_bf16.shape == (B * N, n_channels_out, H, W), out_bf16.shape
    assert out_bf16.dtype == jnp.bfloat16, out_bf16.dtype
    assert jnp.allclose(out_bf16.astype(jnp.float32),
                        ref_bf16.astype(jnp.float32), atol=2e-2, rtol=2e-2), \
        float(jnp.max(jnp.abs(out_bf16.astype(jnp.float32)
                              - ref_bf16.astype(jnp.float32))))

    print("KERNEL_OK")
</pallas_src>

<mosaic_0001>
module attributes {stable_mosaic.version = 11 : i64} {
  func.func @_noise_injector_kernel(%arg0: i32, %arg1: memref<2x32x64xf32, #tpu.memory_space<vmem>>, %arg2: memref<2x3x32xf32, #tpu.memory_space<vmem>>, %arg3: memref<2x3x32xf32, #tpu.memory_space<vmem>>, %arg4: memref<32x32xf32, #tpu.memory_space<vmem>>, %arg5: memref<1x32xf32, #tpu.memory_space<vmem>>, %arg6: memref<32x32xf32, #tpu.memory_space<vmem>>, %arg7: memref<1x32xf32, #tpu.memory_space<vmem>>, %arg8: memref<32x4xf32, #tpu.memory_space<vmem>>, %arg9: memref<1x4xf32, #tpu.memory_space<vmem>>, %arg10: memref<2x3x256xf32, #tpu.memory_space<vmem>>) attributes {dimension_semantics = [#tpu.dimension_semantics<parallel>], iteration_bounds = array<i64: 1>, scalar_prefetch = 0 : i64, scratch_operands = 0 : i64, tpu.core_type = #tpu.core_type<tc>, window_params = [{transform_indices = @transform_0, window_bounds = array<i64: 2, 32, 64>}, {transform_indices = @transform_1, window_bounds = array<i64: 2, 3, 32>}, {transform_indices = @transform_2, window_bounds = array<i64: 2, 3, 32>}, {pipeline_mode = #tpu.pipeline_mode<synchronous>, transform_indices = @transform_3, window_bounds = array<i64: 32, 32>}, {pipeline_mode = #tpu.pipeline_mode<synchronous>, transform_indices = @transform_4, window_bounds = array<i64: 1, 32>}, {pipeline_mode = #tpu.pipeline_mode<synchronous>, transform_indices = @transform_5, window_bounds = array<i64: 32, 32>}, {pipeline_mode = #tpu.pipeline_mode<synchronous>, transform_indices = @transform_6, window_bounds = array<i64: 1, 32>}, {pipeline_mode = #tpu.pipeline_mode<synchronous>, transform_indices = @transform_7, window_bounds = array<i64: 32, 4>}, {pipeline_mode = #tpu.pipeline_mode<synchronous>, transform_indices = @transform_8, window_bounds = array<i64: 1, 4>}, {transform_indices = @transform_9, window_bounds = array<i64: 2, 3, 256>}]} {
    %c0 = arith.constant 0 : index
    %c0_0 = arith.constant 0 : index
    %c0_1 = arith.constant 0 : index
    %0 = vector.load %arg1[%c0, %c0_0, %c0_1] : memref<2x32x64xf32, #tpu.memory_space<vmem>>, vector<2x32x64xf32>
    %1 = tpu.transpose %0, [0, 2, 1] : vector<2x32x64xf32> -> vector<2x64x32xf32>
    %c0_2 = arith.constant 0 : index
    %c0_3 = arith.constant 0 : index
    %c0_4 = arith.constant 0 : index
    %2 = vector.load %arg2[%c0_2, %c0_3, %c0_4] : memref<2x3x32xf32, #tpu.memory_space<vmem>>, vector<2x3x32xf32>
    %c0_5 = arith.constant 0 : index
    %c0_6 = arith.constant 0 : index
    %c0_7 = arith.constant 0 : index
    %3 = vector.load %arg3[%c0_5, %c0_6, %c0_7] : memref<2x3x32xf32, #tpu.memory_space<vmem>>, vector<2x3x32xf32>
    %4 = vector.shape_cast %1 : vector<2x64x32xf32> to vector<2x1x64x32xf32>
    %5 = vector.shape_cast %2 : vector<2x3x32xf32> to vector<2x3x1x32xf32>
    %6 = vector.broadcast %4 : vector<2x1x64x32xf32> to vector<2x3x64x32xf32>
    %7 = vector.broadcast %5 : vector<2x3x1x32xf32> to vector<2x3x64x32xf32>
    %8 = arith.addf %6, %7 : vector<2x3x64x32xf32>
    %9 = vector.shape_cast %3 : vector<2x3x32xf32> to vector<2x3x1x32xf32>
    %cst = arith.constant 9.99999974E-6 : f32
    %10 = vector.broadcast %cst : f32 to vector<2x3x1x32xf32>
    %11 = arith.addf %9, %10 : vector<2x3x1x32xf32>
    %12 = vector.broadcast %11 : vector<2x3x1x32xf32> to vector<2x3x64x32xf32>
    %13 = arith.mulf %8, %12 : vector<2x3x64x32xf32>
    %14 = vector.shape_cast %13 : vector<2x3x64x32xf32> to vector<384x32xf32>
    %c0_8 = arith.constant 0 : index
    %c0_9 = arith.constant 0 : index
    %15 = vector.load %arg4[%c0_8, %c0_9] : memref<32x32xf32, #tpu.memory_space<vmem>>, vector<32x32xf32>
    %cst_10 = arith.constant dense<0.000000e+00> : vector<384x32xf32>
    %16 = tpu.matmul %14, %15, %cst_10 {dimension_numbers = #tpu.dot_dimension_numbers<[1], [0], [0], [1], [0, 0, 1, 1], [], []>} : vector<384x32xf32>, vector<32x32xf32>, vector<384x32xf32> -> vector<384x32xf32>
    %c0_11 = arith.constant 0 : index
    %c0_12 = arith.constant 0 : index
    %17 = vector.load %arg5[%c0_11, %c0_12] : memref<1x32xf32, #tpu.memory_space<vmem>>, vector<1x32xf32>
    %18 = vector.broadcast %17 : vector<1x32xf32> to vector<384x32xf32>
    %19 = arith.addf %16, %18 : vector<384x32xf32>
    %cst_13 = arith.constant 0.000000e+00 : f32
    %20 = vector.broadcast %cst_13 : f32 to vector<384x32xf32>
    %21 = arith.maximumf %19, %20 : vector<384x32xf32>
    %c0_14 = arith.constant 0 : index
    %c0_15 = arith.constant 0 : index
    %22 = vector.load %arg6[%c0_14, %c0_15] : memref<32x32xf32, #tpu.memory_space<vmem>>, vector<32x32xf32>
    %cst_16 = arith.constant dense<0.000000e+00> : vector<384x32xf32>
    %23 = tpu.matmul %21, %22, %cst_16 {dimension_numbers = #tpu.dot_dimension_numbers<[1], [0], [0], [1], [0, 0, 1, 1], [], []>} : vector<384x32xf32>, vector<32x32xf32>, vector<384x32xf32> -> vector<384x32xf32>
    %c0_17 = arith.constant 0 : index
    %c0_18 = arith.constant 0 : index
    %24 = vector.load %arg7[%c0_17, %c0_18] : memref<1x32xf32, #tpu.memory_space<vmem>>, vector<1x32xf32>
    %25 = vector.broadcast %24 : vector<1x32xf32> to vector<384x32xf32>
    %26 = arith.addf %23, %25 : vector<384x32xf32>
    %cst_19 = arith.constant 0.000000e+00 : f32
    %27 = vector.broadcast %cst_19 : f32 to vector<384x32xf32>
    %28 = arith.maximumf %26, %27 : vector<384x32xf32>
    %c0_20 = arith.constant 0 : index
    %c0_21 = arith.constant 0 : index
    %29 = vector.load %arg8[%c0_20, %c0_21] : memref<32x4xf32, #tpu.memory_space<vmem>>, vector<32x4xf32>
    %cst_22 = arith.constant dense<0.000000e+00> : vector<384x4xf32>
    %30 = tpu.matmul %28, %29, %cst_22 {dimension_numbers = #tpu.dot_dimension_numbers<[1], [0], [0], [1], [0, 0, 1, 1], [], []>} : vector<384x32xf32>, vector<32x4xf32>, vector<384x4xf32> -> vector<384x4xf32>
    %c0_23 = arith.constant 0 : index
    %c0_24 = arith.constant 0 : index
    %31 = vector.load %arg9[%c0_23, %c0_24] : memref<1x4xf32, #tpu.memory_space<vmem>>, vector<1x4xf32>
    %32 = vector.broadcast %31 : vector<1x4xf32> to vector<384x4xf32>
    %33 = arith.addf %30, %32 : vector<384x4xf32>
    %34 = vector.shape_cast %33 : vector<384x4xf32> to vector<6x64x4xf32>
    %35 = tpu.transpose %34, [0, 2, 1] : vector<6x64x4xf32> -> vector<6x4x64xf32>
    %36 = vector.shape_cast %35 : vector<6x4x64xf32> to vector<2x3x256xf32>
    %c0_25 = arith.constant 0 : index
    %c0_26 = arith.constant 0 : index
    %c0_27 = arith.constant 0 : index
    %37 = vector.load %arg10[%c0_25, %c0_26, %c0_27] : memref<2x3x256xf32, #tpu.memory_space<vmem>>, vector<2x3x256xf32>
    tpu.vector_store %arg10[%c0_25, %c0_26, %c0_27], %36 {strides = array<i32>} : memref<2x3x256xf32, #tpu.memory_space<vmem>>, vector<2x3x256xf32>,
    return
  }
  func.func @transform_0(%arg0: i32) -> (i32, i32, i32) {
    %c0_i32 = arith.constant 0 : i32
    %c0_i32_0 = arith.constant 0 : i32
    %c0_i32_1 = arith.constant 0 : i32
    return %arg0, %c0_i32, %c0_i32_0 : i32, i32, i32
  }
  func.func @transform_1(%arg0: i32) -> (i32, i32, i32) {
    %c0_i32 = arith.constant 0 : i32
    %c0_i32_0 = arith.constant 0 : i32
    %c0_i32_1 = arith.constant 0 : i32
    return %arg0, %c0_i32, %c0_i32_0 : i32, i32, i32
  }
  func.func @transform_2(%arg0: i32) -> (i32, i32, i32) {
    %c0_i32 = arith.constant 0 : i32
    %c0_i32_0 = arith.constant 0 : i32
    %c0_i32_1 = arith.constant 0 : i32
    return %arg0, %c0_i32, %c0_i32_0 : i32, i32, i32
  }
  func.func @transform_3(%arg0: i32) -> (i32, i32) {
    %c0_i32 = arith.constant 0 : i32
    %c0_i32_0 = arith.constant 0 : i32
    %c0_i32_1 = arith.constant 0 : i32
    return %c0_i32, %c0_i32_0 : i32, i32
  }
  func.func @transform_4(%arg0: i32) -> (i32, i32) {
    %c0_i32 = arith.constant 0 : i32
    %c0_i32_0 = arith.constant 0 : i32
    %c0_i32_1 = arith.constant 0 : i32
    return %c0_i32, %c0_i32_0 : i32, i32
  }
  func.func @transform_5(%arg0: i32) -> (i32, i32) {
    %c0_i32 = arith.constant 0 : i32
    %c0_i32_0 = arith.constant 0 : i32
    %c0_i32_1 = arith.constant 0 : i32
    return %c0_i32, %c0_i32_0 : i32, i32
  }
  func.func @transform_6(%arg0: i32) -> (i32, i32) {
    %c0_i32 = arith.constant 0 : i32
    %c0_i32_0 = arith.constant 0 : i32
    %c0_i32_1 = arith.constant 0 : i32
    return %c0_i32, %c0_i32_0 : i32, i32
  }
  func.func @transform_7(%arg0: i32) -> (i32, i32) {
    %c0_i32 = arith.constant 0 : i32
    %c0_i32_0 = arith.constant 0 : i32
    %c0_i32_1 = arith.constant 0 : i32
    return %c0_i32, %c0_i32_0 : i32, i32
  }
  func.func @transform_8(%arg0: i32) -> (i32, i32) {
    %c0_i32 = arith.constant 0 : i32
    %c0_i32_0 = arith.constant 0 : i32
    %c0_i32_1 = arith.constant 0 : i32
    return %c0_i32, %c0_i32_0 : i32, i32
  }
  func.func @transform_9(%arg0: i32) -> (i32, i32, i32) {
    %c0_i32 = arith.constant 0 : i32
    %c0_i32_0 = arith.constant 0 : i32
    %c0_i32_1 = arith.constant 0 : i32
    return %arg0, %c0_i32, %c0_i32_0 : i32, i32, i32
  }
}

</mosaic_0001>

<bundles_post_ra>
// kernel: tpu_custom_call.1
= control target key start
LH: loop header
LB: loop body
LE: loop exit
PB: predicated region body
PF: predicated region fallthrough
CT: control target
= control target key end

     0   :  { %14 = vsyncpa [#allocation3], 0  ;;  %s3551_s0 = inlined_call_operand.vmem [shape: f32[2,32,64], index: 0, kind: input, shape index: {}]   ;;  %s3552_s1 = inlined_call_operand.vmem [shape: f32[2,3,32], index: 1, kind: input, shape index: {}]   ;;  %s3553_s2 = inlined_call_operand.vmem [shape: f32[2,3,32], index: 2, kind: input, shape index: {}]   ;;  %s3554_s3 = inlined_call_operand.hbm [shape: f32[32,32], index: 3, kind: input, shape index: {}]   ;;  %s3555_s4 = inlined_call_operand.vmem [shape: f32[1,32], index: 4, kind: input, shape index: {}]   ;;  %s3556_s5 = inlined_call_operand.hbm [shape: f32[32,32], index: 5, kind: input, shape index: {}]   ;;  %s3557_s6 = inlined_call_operand.vmem [shape: f32[1,32], index: 6, kind: input, shape index: {}]   ;;  %s3558_s7 = inlined_call_operand.vmem [shape: f32[32,4], index: 7, kind: input, shape index: {}]   ;;  %s3559_s8 = inlined_call_operand.vmem [shape: f32[1,4], index: 8, kind: input, shape index: {}]   ;;  %s3560_s9 = inlined_call_operand.vmem [shape: f32[2,3,256], index: 9, kind: output, shape index: {}]  }
   0x1   :  { %15 = vsyncpa [#allocation5], 0  ;;  %s2810_s30 = smov [#allocation2]   ;;  %s2762_s13 = scalar_lea.hbm %s3554_s3, 512 }
   0x2   :  { %s27_s10 = sshll.u32 %s2810_s30, 4  ;;  %p2763_p0 = scmp.ne.s32.totalorder %s3554_s3, %s2762_s13  ;;  %s28_s10 = int_to_ptr.vmem [resolvable:$true] %s27_s10 }
   0x3   :  { %p2766_p1 = scmp.lt.u32.totalorder %s2762_s13, %s3554_s3 }
   0x5   :  { %p2768_p2 = pnand %p2766_p1, %p2763_p0 }
   0x7   :  { %2771 = shalt.err (!%p2768_p2)
}
   0x8   :  { %s2772_s18 = scalar_lea.vmem %s28_s10, 512  ;;  %p2777_p4 = scmp.lt.s32.totalorder %s28_s10, %s28_s10 }
   0x9   :  { %p2773_p3 = scmp.ne.s32.totalorder %s28_s10, %s2772_s18  ;;  %p2778_p5 = scmp.lt.s32.totalorder %s2772_s18, %s2772_s18 }
   0xb   :  { %p2779_p6 = por %p2778_p5, %p2777_p4 }
   0xd   :  { %p2780_p7 = pnand %p2779_p6, %p2773_p3 }
   0xf   :  { %2783 = shalt.err (!%p2780_p7)
}
  0x10   :  { %s2811_s19 = smov 128   ;;  %s2812_s20 = smov 8  }
  0x11   :  { %33 = dma.hbm_to_vmem [thread:$0]  %s3554_s3, 512, %s28_s10, [#allocation3], %s2811_s19, %s2811_s19, %s2812_s20  }
  0x12   :  { %s2813_s23 = smov [#allocation4]   ;;  %s2784_s27 = scalar_lea.hbm %s3556_s5, 512 }
  0x13   :  { %s41_s24 = sshll.u32 %s2813_s23, 4  ;;  %p2785_p8 = scmp.ne.s32.totalorder %s3556_s5, %s2784_s27  ;;  %s42_s24 = int_to_ptr.vmem [resolvable:$true] %s41_s24 }
  0x14   :  { %p2788_p9 = scmp.lt.u32.totalorder %s2784_s27, %s3556_s5 }
  0x16   :  { %p2790_p10 = pnand %p2788_p9, %p2785_p8 }
  0x18   :  { %2793 = shalt.err (!%p2790_p10)
}
  0x19   :  { %s2794_s12 = scalar_lea.vmem %s42_s24, 512  ;;  %p2799_p12 = scmp.lt.s32.totalorder %s42_s24, %s42_s24 }
  0x1a   :  { %p2795_p11 = scmp.ne.s32.totalorder %s42_s24, %s2794_s12  ;;  %p2800_p13 = scmp.lt.s32.totalorder %s2794_s12, %s2794_s12 }
  0x1c   :  { %p2801_p0 = por %p2800_p13, %p2799_p12 }
  0x1e   :  { %p2802_p1 = pnand %p2801_p0, %p2795_p11 }
  0x20   :  { %2805 = shalt.err (!%p2802_p1)
}
  0x21   :  { %47 = dma.hbm_to_vmem [thread:$0]  %s3556_s5, 512, %s42_s24, [#allocation5], %s2811_s19, %s2811_s19, %s2812_s20  }
  0x22   :  { %2806 = dma.done.wait [#allocation3], 512  }
  0x23   :  { %2807 = vsyncadd [#allocation3], 4294966784 }
  0x24   :  { %2808 = dma.done.wait [#allocation5], 512  }
  0x25   :  { %2809 = vsyncadd [#allocation5], 4294966784  ;;  %v60_v0 = vld [vmem:[%s3551_s0] sm:$0xff]  ;;  %v61_v2 = vld [vmem:[%s3551_s0 + $0x8] sm:$0xff]  ;;  %v2814_v17 = vmov 1966171168   ;;  %v149_v19 = vlaneseq }
  0x26   :  { %v64_v1 = vld [vmem:[%s3551_s0 + $0x20] sm:$0xff]  ;;  %68 = vxpose.xlu0.b32.start [1/4] (short) (narrow) %v60_v0, 64  ;;  %v65_v3 = vld [vmem:[%s3551_s0 + $0x28] sm:$0xff]  ;;  %v62_v7 = vld [vmem:[%s3551_s0 + $0x10] sm:$0xff]  ;;  %v147_v18 = vunpack.c.l.s4 %v2814_v17  ;;  %vm417_vm0 = vcmask 261120   ;;  %vm2157_vm1 = vcmask 523264  }
  0x27   :  { %100 = vxpose.xlu1.b32.start [1/4] (short) (narrow) %v64_v1, 64  ;;  %v406_v4 = vld [vmem:[#allocation2] sm:$0xff]  ;;  %v407_v5 = vld [vmem:[#allocation2 + $0x8] sm:$0xff]  ;;  %v66_v8 = vld [vmem:[%s3551_s0 + $0x30] sm:$0xff]  ;;  %v2917_v21 = vshrl.u32 %v149_v19, 7 }
  0x28   :  { %v2725_v6 = vpack.c.bf16 %v407_v5, %v406_v4  ;;  %v408_v9 = vld [vmem:[#allocation2 + $0x10] sm:$0xff]  ;;  %v409_v10 = vld [vmem:[#allocation2 + $0x18] sm:$0xff]  ;;  %v915_v14 = vld [vmem:[#allocation4] sm:$0xff]  ;;  %v148_v20 = vunpack.c.0.s8 %v147_v18 }
  0x29   :  { %v63_v11 = vld [vmem:[%s3551_s0 + $0x18] sm:$0xff]  ;;  %v2729_v13 = vpack.c.bf16 %v409_v10, %v408_v9  ;;  %v916_v15 = vld [vmem:[#allocation4 + $0x8] sm:$0xff]  ;;  %v2922_v22 = vld.sshfl [vmem:[%s3553_s2 + $0x4] sm:$0x13 pattern:$0x75316420] }
  0x2a   :  { %69 = vxpose.xlu0.b32.cont [2/4] (short) (narrow) %v61_v2, 64  ;;  %2726 = vmatprep.subr.bf16.mxu0 %v2725_v6  ;;  %v67_v12 = vld [vmem:[%s3551_s0 + $0x38] sm:$0xff]  ;;  %v2733_v16 = vpack.c.bf16 %v916_v15, %v915_v14  ;;  %v2927_v23 = vld.sshfl [vmem:[%s3553_s2] sm:$0x13 pattern:$0x75316420]  ;;  %v2930_v24 = vsub.s32 %v148_v20, %v2917_v21  ;;  %v294_v0 = vcombine.high %v2922_v22, %v2922_v22 }
  0x2b   :  { %101 = vxpose.xlu1.b32.cont [2/4] (short) (narrow) %v65_v3, 64  ;;  %2728 = vmatpush3.bf16.msra.mxu0 %v2725_v6  ;;  %v2179_v25 = vld.sshfl [vmem:[%s3552_s1 + $0x4] sm:$0x13 pattern:$0x75316420]  ;;  %v2945_v28 = vsub.s32 0, %v2917_v21  ;;  %v271_v4 = vcombine.high %v2927_v23, %v2927_v23 }
  0x2c   :  { %2749 = vmatprep.subr.bf16.mxu1 %v2725_v6  ;;  %2730 = vmatprep.subr.bf16.mxu0 %v2729_v13  ;;  %v2937_v26 = vrot.slane %v2922_v22, %v2930_v24  ;;  %v2942_v27 = vld.sshfl [vmem:[%s3552_s1] sm:$0x13 pattern:$0x75316420]  ;;  %v2949_v29 = vrot.slane %v2927_v23, %v2930_v24  ;;  %v2952_v30 = vrot.slane %v2179_v25, %v2930_v24  ;;  %v917_v48 = vld [vmem:[#allocation4 + $0x10] sm:$0xff]  ;;  %v918_v49 = vld [vmem:[#allocation4 + $0x18] sm:$0xff] }
  0x2d   :  { %2751 = vmatpush3.bf16.msra.mxu1 %v2725_v6  ;;  %v2956_v31 = vrot.slane %v2942_v27, %v2930_v24  ;;  %v2737_v54 = vpack.c.bf16 %v918_v49, %v917_v48  ;;  %v168_v63 = vcombine.high %v2179_v25, %v2179_v25  ;;  %v145_v3 = vcombine.high %v2942_v27, %v2942_v27 }
  0x2e   :  { %70 = vxpose.xlu0.b32.cont [3/4] (short) (narrow) %v62_v7, 64  ;;  %2750 = vmatprep.subr.bf16.mxu1 %v2729_v13  ;;  %v316_v32 = vadd.f32 1e-05, %v2949_v29  ;;  %v319_v33 = vadd.f32 1e-05, %v2937_v26  ;;  %v2966_v35 = vrot.slane %v2952_v30, %v2945_v28  ;;  %v308_v10 = vrot.slane %v294_v0, %v2930_v24 }
  0x2f   :  { %102 = vxpose.xlu1.b32.cont [3/4] (short) (narrow) %v66_v8, 64  ;;  %2732 = vmatpush3.bf16.msra.mxu0 %v2729_v13  ;;  %v2962_v34 = vrot.slane %v2956_v31, %v2945_v28  ;;  %v182_v9 = vrot.slane %v168_v63, %v2930_v24  ;;  %v285_v14 = vrot.slane %v271_v4, %v2930_v24 }
  0x30   :  { %v2973_v38 = vrot.slane %v316_v32, %v2945_v28  ;;  %v2976_v39 = vrot.slane %v319_v33, %v2945_v28  ;;  %v320_v20 = vadd.f32 1e-05, %v308_v10  ;;  %v160_v4 = vcombine.high %v2956_v31, %v2956_v31 }
  0x31   :  { %2752 = vmatpush3.bf16.msra.mxu1 %v2729_v13  ;;  %v159_v13 = vrot.slane %v145_v3, %v2930_v24  ;;  %v3052_v19 = vrot.slane %v182_v9, %v2945_v28  ;;  %v317_v25 = vadd.f32 1e-05, %v285_v14 }
  0x32   :  { %71 = vxpose.xlu0.b32.end [4/4] (short) (narrow) %v63_v11, 64  ;;  %2734 = vmatprep.subr.bf16.mxu1 %v2733_v16 }
  0x33   :  { %103 = vxpose.xlu1.b32.end [4/4] (short) (narrow) %v67_v12, 64  ;;  %v3058_v24 = vrot.slane %v159_v13, %v2945_v28 }
  0xa6   :  { %v2968_v36 = vpop.trf.xlu0 }
  0xa7   :  { %v2970_v37 = vpop.trf.xlu1  ;;  %v214_v40 = vadd.f32 %v2962_v34, %v2968_v36  ;;  %v222_v48 = vadd.f32 %v3058_v24, %v2968_v36 }
  0xa8   :  { %v238_v41 = vadd.f32 %v2966_v35, %v2970_v37 }
  0xa9   :  { %v358_v43 = vmul.f32 %v2973_v38, %v214_v40 }
  0xaa   :  { %v2982_v42 = vpop.trf.xlu0  ;;  %v382_v45 = vmul.f32 %v2976_v39, %v238_v41  ;;  %v3070_v41 = vrot.slane %v320_v20, %v2945_v28 }
  0xab   :  { %v2985_v44 = vpop.trf.xlu1  ;;  %v215_v46 = vadd.f32 %v2962_v34, %v2982_v42  ;;  %2493 = vmatprep.mubr.msk.f32.mxu0 %vm417_vm0, %v358_v43  ;;  %v246_v43 = vadd.f32 %v3052_v19, %v2970_v37 }
  0xac   :  { %v239_v47 = vadd.f32 %v2966_v35, %v2985_v44  ;;  %2529 = vmatprep.mubr.msk.f32.mxu1 %vm417_vm0, %v382_v45 }
  0xad   :  { %v359_v50 = vmul.f32 %v2973_v38, %v215_v46 }
  0xae   :  { %v383_v51 = vmul.f32 %v2976_v39, %v239_v47  ;;  %v2996_v52 = vpop.trf.xlu0  ;;  %v3078_v47 = vrot.slane %v317_v25, %v2945_v28 }
  0xaf   :  { %v2998_v53 = vpop.trf.xlu1  ;;  %v216_v55 = vadd.f32 %v2962_v34, %v2996_v52  ;;  %2494 = vmatmul.mubr.msk.f32.vlgmr.msra.gmra.mrb[0].mxu0 %vm417_vm0, %v359_v50  ;;  %v224_v63 = vadd.f32 %v3058_v24, %v2996_v52 }
  0xb0   :  { %v240_v56 = vadd.f32 %v2966_v35, %v2998_v53  ;;  %2530 = vmatmul.mubr.msk.f32.vlgmr.msra.gmra.mrb[0].mxu1 %vm417_vm0, %v383_v51  ;;  %v247_v51 = vadd.f32 %v3052_v19, %v2985_v44 }
  0xb1   :  { %v360_v57 = vmul.f32 %v2973_v38, %v216_v55  ;;  %2736 = vmatpush3.bf16.msra.mxu1 %v2733_v16 }
  0xb2   :  { %v384_v58 = vmul.f32 %v2976_v39, %v240_v56  ;;  %v3008_v59 = vpop.trf.xlu0  ;;  %2738 = vmatprep.subr.bf16.mxu1 %v2737_v54  ;;  %v390_v56 = vmul.f32 %v3070_v41, %v246_v43  ;;  %v391_v0 = vmul.f32 %v3070_v41, %v247_v51 }
  0xb3   :  { %v3010_v60 = vpop.trf.xlu1  ;;  %v217_v61 = vadd.f32 %v2962_v34, %v3008_v59  ;;  %2496 = vmatprep.mubr.msk.f32.mxu0 %vm417_vm0, %v360_v57  ;;  %v248_v57 = vadd.f32 %v3052_v19, %v2998_v53  ;;  %v225_v3 = vadd.f32 %v3058_v24, %v3008_v59 }
  0xb4   :  { %v241_v62 = vadd.f32 %v2966_v35, %v3010_v60  ;;  %2532 = vmatprep.mubr.msk.f32.mxu1 %vm417_vm0, %v384_v58  ;;  %v223_v58 = vadd.f32 %v3058_v24, %v2982_v42 }
  0xb5   :  { %v361_v1 = vmul.f32 %v2973_v38, %v217_v61  ;;  %2740 = vmatpush3.bf16.msra.mxu1 %v2737_v54  ;;  %v369_v13 = vmul.f32 %v3078_v47, %v225_v3  ;;  %v1426_v3 = vld [vmem:[%s3558_s7 + $0x18] sm:$0xff] }
  0xb6   :  { %v385_v2 = vmul.f32 %v2976_v39, %v241_v62  ;;  %v3026_v5 = vpop.trf.xlu0 }
  0xb7   :  { %v3028_v6 = vpop.trf.xlu1  ;;  %v218_v7 = vadd.f32 %v2962_v34, %v3026_v5  ;;  %2497 = vmatmul.mubr.msk.f32.gmra.mrb[2].mxu0 %vm417_vm0, %v361_v1  ;;  %v249_v1 = vadd.f32 %v3052_v19, %v3010_v60 }
  0xb8   :  { %v242_v8 = vadd.f32 %v2966_v35, %v3028_v6  ;;  %2533 = vmatmul.mubr.msk.f32.gmra.mrb[2].mxu1 %vm417_vm0, %v385_v2  ;;  %v250_v2 = vadd.f32 %v3052_v19, %v3028_v6 }
  0xb9   :  { %v362_v11 = vmul.f32 %v2973_v38, %v218_v7  ;;  %v368_v7 = vmul.f32 %v3078_v47, %v224_v63  ;;  %v393_v9 = vmul.f32 %v3070_v41, %v249_v1 }
  0xba   :  { %v386_v12 = vmul.f32 %v2976_v39, %v242_v8  ;;  %v3042_v15 = vpop.trf.xlu0  ;;  %v226_v8 = vadd.f32 %v3058_v24, %v3026_v5 }
  0xbb   :  { %v3044_v16 = vpop.trf.xlu1  ;;  %v219_v17 = vadd.f32 %v2962_v34, %v3042_v15  ;;  %2499 = vmatprep.mubr.msk.f32.mxu0 %vm417_vm0, %v362_v11  ;;  %v227_v14 = vadd.f32 %v3058_v24, %v3042_v15 }
  0xbc   :  { %v243_v18 = vadd.f32 %v2966_v35, %v3044_v16  ;;  %2535 = vmatprep.mubr.msk.f32.mxu1 %vm417_vm0, %v386_v12  ;;  %v251_v10 = vadd.f32 %v3052_v19, %v3044_v16  ;;  %v370_v20 = vmul.f32 %v3078_v47, %v226_v8 }
  0xbd   :  { %v363_v22 = vmul.f32 %v2973_v38, %v219_v17  ;;  %v195_v17 = vrot.slane %v160_v4, %v2945_v28 }
  0xbe   :  { %v387_v23 = vmul.f32 %v2976_v39, %v243_v18  ;;  %v3060_v27 = vpop.trf.xlu0 }
  0xbf   :  { %v3062_v32 = vpop.trf.xlu1  ;;  %v220_v33 = vadd.f32 %v2962_v34, %v3060_v27  ;;  %2500 = vmatmul.mubr.msk.f32.gmra.mrb[4].mxu0 %vm417_vm0, %v363_v22  ;;  %v228_v22 = vadd.f32 %v3058_v24, %v3060_v27  ;;  %v235_v63 = vadd.f32 %v195_v17, %v3042_v15 }
  0xc0   :  { %v244_v40 = vadd.f32 %v2966_v35, %v3062_v32  ;;  %2536 = vmatmul.mubr.msk.f32.gmra.mrb[4].mxu1 %vm417_vm0, %v387_v23  ;;  %v252_v12 = vadd.f32 %v3052_v19, %v3062_v32  ;;  %v395_v23 = vmul.f32 %v3070_v41, %v251_v10 }
  0xc1   :  { %v364_v45 = vmul.f32 %v2973_v38, %v220_v33  ;;  %v372_v51 = vmul.f32 %v3078_v47, %v228_v22 }
  0xc2   :  { %v388_v46 = vmul.f32 %v2976_v39, %v244_v40  ;;  %v3082_v49 = vpop.trf.xlu0  ;;  %v396_v43 = vmul.f32 %v3070_v41, %v252_v12 }
  0xc3   :  { %v3084_v50 = vpop.trf.xlu1  ;;  %v221_v54 = vadd.f32 %v2962_v34, %v3082_v49  ;;  %2502 = vmatprep.mubr.msk.f32.mxu0 %vm417_vm0, %v364_v45  ;;  %v366_v34 = vmul.f32 %v3078_v47, %v222_v48  ;;  %v371_v45 = vmul.f32 %v3078_v47, %v227_v14  ;;  %v230_v48 = vadd.f32 %v195_v17, %v2968_v36 }
  0xc4   :  { %v245_v55 = vadd.f32 %v2966_v35, %v3084_v50  ;;  %2538 = vmatprep.mubr.msk.f32.mxu1 %vm417_vm0, %v388_v46  ;;  %v183_v35 = vcombine.high %v2952_v30, %v2952_v30  ;;  %v367_v30 = vmul.f32 %v3078_v47, %v223_v58  ;;  %v253_v25 = vadd.f32 %v3052_v19, %v3084_v50 }
  0xc5   :  { %v365_v61 = vmul.f32 %v2973_v38, %v221_v54  ;;  %v309_v38 = vcombine.high %v2937_v26, %v2937_v26  ;;  %v286_v26 = vcombine.high %v2949_v29, %v2949_v29  ;;  %v394_v29 = vmul.f32 %v3070_v41, %v250_v2  ;;  %v1425_v2 = vld [vmem:[%s3558_s7 + $0x10] sm:$0xff] }
  0xc6   :  { %v389_v62 = vmul.f32 %v2976_v39, %v245_v55  ;;  %v392_v39 = vmul.f32 %v3070_v41, %v248_v57  ;;  %v3134_v11 = vrot.slane %v183_v35, %v2945_v28  ;;  %v229_v19 = vadd.f32 %v3058_v24, %v3082_v49 }
  0xc7   :  { %2503 = vmatmul.mubr.msk.f32.gmra.mrb[6].mxu0 %vm417_vm0, %v365_v61  ;;  %v321_v31 = vadd.f32 1e-05, %v309_v38  ;;  %v318_v18 = vadd.f32 1e-05, %v286_v26  ;;  %v397_v54 = vmul.f32 %v3070_v41, %v253_v25  ;;  %v234_v61 = vadd.f32 %v195_v17, %v3026_v5  ;;  %v3225_v26 = vld [vmem:[%s3555_s4] ss:$0 sm:$0xff] }
  0xc8   :  { %2539 = vmatmul.mubr.msk.f32.gmra.mrb[6].mxu1 %vm417_vm0, %v389_v62  ;;  %2505 = vmatprep.mubr.msk.f32.mxu0 %vm417_vm0, %v366_v34  ;;  %v254_v40 = vadd.f32 %v3134_v11, %v2970_v37  ;;  %v255_v37 = vadd.f32 %v3134_v11, %v2985_v44  ;;  %v373_v36 = vmul.f32 %v3078_v47, %v229_v19 }
  0xc9   :  { %2541 = vmatprep.mubr.msk.f32.mxu1 %vm417_vm0, %v390_v56  ;;  %v351_v33 = vrot.slane %v321_v31, %v2945_v28  ;;  %v339_v46 = vrot.slane %v318_v18, %v2945_v28  ;;  %v256_v56 = vadd.f32 %v3134_v11, %v2998_v53  ;;  %v231_v28 = vadd.f32 %v195_v17, %v2982_v42 }
  0xca   :  { %v232_v44 = vadd.f32 %v195_v17, %v2996_v52  ;;  %v257_v57 = vadd.f32 %v3134_v11, %v3010_v60  ;;  %v258_v58 = vadd.f32 %v3134_v11, %v3028_v6  ;;  %v233_v47 = vadd.f32 %v195_v17, %v3008_v59 }
  0xcb   :  { %2506 = vmatmul.mubr.msk.f32.gmra.mrb[8].mxu0 %vm417_vm0, %v367_v30  ;;  %v398_v55 = vmul.f32 %v351_v33, %v254_v40  ;;  %v374_v24 = vmul.f32 %v339_v46, %v230_v48  ;;  %v399_v41 = vmul.f32 %v351_v33, %v255_v37  ;;  %v400_v53 = vmul.f32 %v351_v33, %v256_v56 }
  0xcc   :  { %2542 = vmatmul.mubr.msk.f32.gmra.mrb[8].mxu1 %vm417_vm0, %v391_v0  ;;  %2508 = vmatprep.mubr.msk.f32.mxu0 %vm417_vm0, %v368_v7  ;;  %v375_v42 = vmul.f32 %v339_v46, %v231_v28  ;;  %v376_v52 = vmul.f32 %v339_v46, %v232_v44  ;;  %v401_v62 = vmul.f32 %v351_v33, %v257_v57 }
  0xcd   :  { %2544 = vmatprep.mubr.msk.f32.mxu1 %vm417_vm0, %v392_v39  ;;  %v259_v60 = vadd.f32 %v3134_v11, %v3044_v16  ;;  %v402_v34 = vmul.f32 %v351_v33, %v258_v58  ;;  %v260_v6 = vadd.f32 %v3134_v11, %v3062_v32  ;;  %v377_v59 = vmul.f32 %v339_v46, %v233_v47 }
  0xce   :  { %v378_v5 = vmul.f32 %v339_v46, %v234_v61  ;;  %v236_v35 = vadd.f32 %v195_v17, %v3060_v27  ;;  %v261_v16 = vadd.f32 %v3134_v11, %v3084_v50  ;;  %v379_v32 = vmul.f32 %v339_v46, %v235_v63  ;;  %v1423_v50 = vld [vmem:[%s3558_s7] sm:$0xff] }
  0xcf   :  { %2509 = vmatmul.mubr.msk.f32.gmra.mrb[10].mxu0 %vm417_vm0, %v369_v13  ;;  %v403_v0 = vmul.f32 %v351_v33, %v259_v60  ;;  %v404_v1 = vmul.f32 %v351_v33, %v260_v6  ;;  %v237_v38 = vadd.f32 %v195_v17, %v3082_v49  ;;  %v1424_v49 = vld [vmem:[%s3558_s7 + $0x8] sm:$0xff]  ;;  %v2745_v4 = vpack.c.bf16 %v1426_v3, %v1425_v2 }
  0xd0   :  { %2545 = vmatmul.mubr.msk.f32.gmra.mrb[10].mxu1 %vm417_vm0, %v393_v9  ;;  %2511 = vmatprep.mubr.msk.f32.mxu0 %vm417_vm0, %v370_v20  ;;  %v380_v15 = vmul.f32 %v339_v46, %v236_v35  ;;  %v405_v39 = vmul.f32 %v351_v33, %v261_v16  ;;  %v2741_v30 = vpack.c.bf16 %v1424_v49, %v1423_v50 }
  0xd1   :  { %2547 = vmatprep.mubr.msk.f32.mxu1 %vm417_vm0, %v394_v29  ;;  %v381_v27 = vmul.f32 %v339_v46, %v237_v38 }
  0xd2   :  { %2742 = vmatprep.subr.bf16.mxu0 %v2741_v30 }
  0xd3   :  { %2512 = vmatmul.mubr.msk.f32.gmra.mrb[12].mxu0 %vm417_vm0, %v371_v45 }
  0xd4   :  { %2548 = vmatmul.mubr.msk.f32.gmra.mrb[12].mxu1 %vm417_vm0, %v395_v23  ;;  %2514 = vmatprep.mubr.msk.f32.mxu0 %vm417_vm0, %v372_v51 }
  0xd5   :  { %2550 = vmatprep.mubr.msk.f32.mxu1 %vm417_vm0, %v396_v43  ;;  %2744 = vmatpush3.bf16.msra.mxu0 %v2741_v30 }
  0xd6   :  { %2746 = vmatprep.subr.bf16.mxu0 %v2745_v4 }
  0xd7   :  { %2515 = vmatmul.mubr.msk.f32.gmra.mrb[14].mxu0 %vm417_vm0, %v373_v36 }
  0xd8   :  { %2551 = vmatmul.mubr.msk.f32.gmra.mrb[14].mxu1 %vm417_vm0, %v397_v54  ;;  %2517 = vmatprep.mubr.msk.f32.mxu0 %vm417_vm0, %v374_v24 }
  0xd9   :  { %2553 = vmatprep.mubr.msk.f32.mxu1 %vm417_vm0, %v398_v55  ;;  %2748 = vmatpush3.bf16.msra.mxu0 %v2745_v4 }
  0xdb   :  { %2518 = vmatmul.mubr.msk.f32.gmra.mrb[16].mxu0 %vm417_vm0, %v375_v42 }
  0xdc   :  { %2554 = vmatmul.mubr.msk.f32.gmra.mrb[16].mxu1 %vm417_vm0, %v399_v41  ;;  %2520 = vmatprep.mubr.msk.f32.mxu0 %vm417_vm0, %v376_v52 }
  0xdd   :  { %2556 = vmatprep.mubr.msk.f32.mxu1 %vm417_vm0, %v400_v53 }
  0xdf   :  { %2521 = vmatmul.mubr.msk.f32.gmra.mrb[18].mxu0 %vm417_vm0, %v377_v59 }
  0xe0   :  { %2557 = vmatmul.mubr.msk.f32.gmra.mrb[18].mxu1 %vm417_vm0, %v401_v62  ;;  %2523 = vmatprep.mubr.msk.f32.mxu0 %vm417_vm0, %v378_v5 }
  0xe1   :  { %2559 = vmatprep.mubr.msk.f32.mxu1 %vm417_vm0, %v402_v34 }
  0xe3   :  { %2524 = vmatmul.mubr.msk.f32.gmra.mrb[20].mxu0 %vm417_vm0, %v379_v32 }
  0xe4   :  { %2560 = vmatmul.mubr.msk.f32.gmra.mrb[20].mxu1 %vm417_vm0, %v403_v0  ;;  %2526 = vmatprep.mubr.msk.f32.mxu0 %vm417_vm0, %v380_v15 }
  0xe5   :  { %2562 = vmatprep.mubr.msk.f32.mxu1 %vm417_vm0, %v404_v1 }
  0xe7   :  { %2527 = vmatmul.mubr.msk.f32.gmra.mrb[22].mxu0 %vm417_vm0, %v381_v27 }
  0xe8   :  { %2563 = vmatmul.mubr.msk.f32.gmra.mrb[22].mxu1 %vm417_vm0, %v405_v39 }
 0x182   :  { %v2495_v7 = vpop.f32.mrb[0].mxu0 }
 0x183   :  { %v634_v8 = vadd.f32 %v2495_v7, %v3225_v26  ;;  %v628_v9 = vpop.f32.mrb[1].mxu0  ;;  %v3228_v10 = vpop.f32.mrb[0].mxu1 }
 0x184   :  { %v629_v11 = vadd.f32 %v3225_v26, %v628_v9  ;;  %v3231_v31 = vpop.f32.mrb[1].mxu1 }
 0x185   :  { %v868_v12 = vmax.f32 %v634_v8, 0.0 }
 0x186   :  { %v867_v29 = vmax.f32 %v629_v11, 0.0 }
 0x188   :  { %2573 = vmatprep.mubr.msk.f32.mxu1 %vm417_vm0, %v867_v29 }
 0x189   :  { %2574 = vmatmul.mubr.msk.f32.vlgmr.msra.gmra.mrb[24].mxu1 %vm417_vm0, %v868_v12 }
 0x18a   :  { %v2498_v13 = vpop.f32.mrb[2].mxu0 }
 0x18b   :  { %v644_v14 = vadd.f32 %v2498_v13, %v3225_v26  ;;  %v638_v17 = vpop.f32.mrb[3].mxu0  ;;  %v2534_v18 = vpop.f32.mrb[2].mxu1 }
 0x18c   :  { %v639_v20 = vadd.f32 %v3225_v26, %v638_v17  ;;  %v3238_v22 = vadd.f32 %v2534_v18, %v3225_v26  ;;  %v3240_v23 = vpop.f32.mrb[3].mxu1 }
 0x18d   :  { %v870_v33 = vmax.f32 %v644_v14, 0.0 }
 0x18e   :  { %v869_v25 = vmax.f32 %v639_v20, 0.0 }
 0x190   :  { %2576 = vmatprep.mubr.msk.f32.mxu1 %vm417_vm0, %v869_v25 }
 0x191   :  { %2577 = vmatmul.mubr.msk.f32.gmra.mrb[26].mxu1 %vm417_vm0, %v870_v33 }
 0x192   :  { %v2501_v40 = vpop.f32.mrb[4].mxu0 }
 0x193   :  { %v654_v43 = vadd.f32 %v2501_v40, %v3225_v26  ;;  %v648_v45 = vpop.f32.mrb[5].mxu0  ;;  %v2537_v19 = vpop.f32.mrb[4].mxu1 }
 0x194   :  { %v649_v46 = vadd.f32 %v3225_v26, %v648_v45  ;;  %v3247_v48 = vadd.f32 %v2537_v19, %v3225_v26  ;;  %v768_v51 = vpop.f32.mrb[5].mxu1 }
 0x195   :  { %v3250_v37 = vadd.f32 %v3225_v26, %v768_v51  ;;  %v872_v55 = vmax.f32 %v654_v43, 0.0 }
 0x196   :  { %v871_v54 = vmax.f32 %v649_v46, 0.0 }
 0x198   :  { %2579 = vmatprep.mubr.msk.f32.mxu1 %vm417_vm0, %v871_v54 }
 0x199   :  { %2580 = vmatmul.mubr.msk.f32.gmra.mrb[28].mxu1 %vm417_vm0, %v872_v55 }
 0x19a   :  { %v2504_v56 = vpop.f32.mrb[6].mxu0 }
 0x19b   :  { %v2540_v28 = vpop.f32.mrb[6].mxu1  ;;  %v664_v36 = vadd.f32 %v2504_v56, %v3225_v26  ;;  %v658_v24 = vpop.f32.mrb[7].mxu0 }
 0x19c   :  { %v3256_v44 = vadd.f32 %v2540_v28, %v3225_v26  ;;  %v778_v41 = vpop.f32.mrb[7].mxu1  ;;  %v659_v57 = vadd.f32 %v3225_v26, %v658_v24 }
 0x19d   :  { %v3260_v53 = vadd.f32 %v3225_v26, %v778_v41  ;;  %v874_v52 = vmax.f32 %v664_v36, 0.0 }
 0x19e   :  { %v873_v58 = vmax.f32 %v659_v57, 0.0  ;;  %v2507_v42 = vpop.f32.mrb[8].mxu0 }
 0x19f   :  { %v2543_v47 = vpop.f32.mrb[8].mxu1  ;;  %v674_v61 = vadd.f32 %v2507_v42, %v3225_v26  ;;  %v668_v62 = vpop.f32.mrb[9].mxu0 }
 0x1a0   :  { %v3264_v60 = vadd.f32 %v2543_v47, %v3225_v26  ;;  %v788_v34 = vpop.f32.mrb[9].mxu1  ;;  %v669_v6 = vadd.f32 %v3225_v26, %v668_v62  ;;  %2582 = vmatprep.mubr.msk.f32.mxu1 %vm417_vm0, %v873_v58 }
 0x1a1   :  { %v3269_v59 = vadd.f32 %v3225_v26, %v788_v34  ;;  %2583 = vmatmul.mubr.msk.f32.gmra.mrb[30].mxu1 %vm417_vm0, %v874_v52  ;;  %v876_v0 = vmax.f32 %v674_v61, 0.0 }
 0x1a2   :  { %v875_v63 = vmax.f32 %v669_v6, 0.0  ;;  %v2510_v5 = vpop.f32.mrb[10].mxu0 }
 0x1a3   :  { %v2546_v35 = vpop.f32.mrb[10].mxu1  ;;  %v684_v16 = vadd.f32 %v2510_v5, %v3225_v26  ;;  %v678_v1 = vpop.f32.mrb[11].mxu0 }
 0x1a4   :  { %v3274_v32 = vadd.f32 %v2546_v35, %v3225_v26  ;;  %v798_v38 = vpop.f32.mrb[11].mxu1  ;;  %v679_v15 = vadd.f32 %v3225_v26, %v678_v1  ;;  %2585 = vmatprep.mubr.msk.f32.mxu1 %vm417_vm0, %v875_v63 }
 0x1a5   :  { %v3279_v39 = vadd.f32 %v3225_v26, %v798_v38  ;;  %2586 = vmatmul.mubr.msk.f32.gmra.mrb[32].mxu1 %vm417_vm0, %v876_v0  ;;  %v878_v2 = vmax.f32 %v684_v16, 0.0 }
 0x1a6   :  { %v877_v27 = vmax.f32 %v679_v15, 0.0  ;;  %v2513_v50 = vpop.f32.mrb[12].mxu0 }
 0x1a7   :  { %v2549_v49 = vpop.f32.mrb[12].mxu1  ;;  %v694_v30 = vadd.f32 %v2513_v50, %v3225_v26  ;;  %v688_v3 = vpop.f32.mrb[13].mxu0 }
 0x1a8   :  { %v3284_v4 = vadd.f32 %v2549_v49, %v3225_v26  ;;  %v808_v7 = vpop.f32.mrb[13].mxu1  ;;  %v689_v8 = vadd.f32 %v3225_v26, %v688_v3  ;;  %2588 = vmatprep.mubr.msk.f32.mxu1 %vm417_vm0, %v877_v27 }
 0x1a9   :  { %v3289_v9 = vadd.f32 %v3225_v26, %v808_v7  ;;  %2589 = vmatmul.mubr.msk.f32.gmra.mrb[34].mxu1 %vm417_vm0, %v878_v2  ;;  %v880_v13 = vmax.f32 %v694_v30, 0.0 }
 0x1aa   :  { %v879_v11 = vmax.f32 %v689_v8, 0.0  ;;  %v2516_v29 = vpop.f32.mrb[14].mxu0 }
 0x1ab   :  { %v2552_v12 = vpop.f32.mrb[14].mxu1  ;;  %v704_v14 = vadd.f32 %v2516_v29, %v3225_v26  ;;  %v698_v17 = vpop.f32.mrb[15].mxu0 }
 0x1ac   :  { %v3294_v18 = vadd.f32 %v2552_v12, %v3225_v26  ;;  %v818_v20 = vpop.f32.mrb[15].mxu1  ;;  %v699_v25 = vadd.f32 %v3225_v26, %v698_v17  ;;  %2591 = vmatprep.mubr.msk.f32.mxu1 %vm417_vm0, %v879_v11  ;;  %v749_v11 = vadd.f32 %v3225_v26, %v3231_v31 }
 0x1ad   :  { %v3299_v33 = vadd.f32 %v3225_v26, %v818_v20  ;;  %2592 = vmatmul.mubr.msk.f32.gmra.mrb[36].mxu1 %vm417_vm0, %v880_v13  ;;  %v882_v19 = vmax.f32 %v704_v14, 0.0  ;;  %v754_v14 = vadd.f32 %v3228_v10, %v3225_v26  ;;  %v895_v10 = vmax.f32 %v3250_v37, 0.0 }
 0x1ae   :  { %v881_v40 = vmax.f32 %v699_v25, 0.0  ;;  %v2519_v43 = vpop.f32.mrb[16].mxu0  ;;  %v891_v20 = vmax.f32 %v749_v11, 0.0  ;;  %v759_v25 = vadd.f32 %v3225_v26, %v3240_v23  ;;  %v896_v23 = vmax.f32 %v3247_v48, 0.0 }
 0x1af   :  { %v2555_v45 = vpop.f32.mrb[16].mxu1  ;;  %v714_v46 = vadd.f32 %v2519_v43, %v3225_v26  ;;  %v708_v51 = vpop.f32.mrb[17].mxu0  ;;  %v892_v31 = vmax.f32 %v754_v14, 0.0  ;;  %v894_v43 = vmax.f32 %v3238_v22, 0.0  ;;  %v900_v22 = vmax.f32 %v3264_v60, 0.0 }
 0x1b0   :  { %v3304_v54 = vadd.f32 %v2555_v45, %v3225_v26  ;;  %v828_v55 = vpop.f32.mrb[17].mxu1  ;;  %v709_v56 = vadd.f32 %v3225_v26, %v708_v51  ;;  %2594 = vmatprep.mubr.msk.f32.mxu1 %vm417_vm0, %v881_v40  ;;  %v893_v40 = vmax.f32 %v759_v25, 0.0  ;;  %v898_v45 = vmax.f32 %v3256_v44, 0.0 }
 0x1b1   :  { %v3309_v28 = vadd.f32 %v3225_v26, %v828_v55  ;;  %2595 = vmatmul.mubr.msk.f32.gmra.mrb[38].mxu1 %vm417_vm0, %v882_v19  ;;  %v884_v57 = vmax.f32 %v714_v46, 0.0  ;;  %v899_v19 = vmax.f32 %v3269_v59, 0.0  ;;  %v901_v37 = vmax.f32 %v3279_v39, 0.0 }
 0x1b2   :  { %v883_v36 = vmax.f32 %v709_v56, 0.0  ;;  %v2522_v24 = vpop.f32.mrb[18].mxu0  ;;  %v902_v48 = vmax.f32 %v3274_v32, 0.0  ;;  %v904_v44 = vmax.f32 %v3284_v4, 0.0  ;;  %v905_v59 = vmax.f32 %v3299_v33, 0.0 }
 0x1b3   :  { %v2558_v41 = vpop.f32.mrb[18].mxu1  ;;  %v724_v58 = vadd.f32 %v2522_v24, %v3225_v26  ;;  %v718_v42 = vpop.f32.mrb[19].mxu0  ;;  %v906_v60 = vmax.f32 %v3294_v18, 0.0  ;;  %v907_v39 = vmax.f32 %v3309_v28, 0.0  ;;  %v908_v32 = vmax.f32 %v3304_v54, 0.0 }
 0x1b4   :  { %v3314_v47 = vadd.f32 %v2558_v41, %v3225_v26  ;;  %v838_v52 = vpop.f32.mrb[19].mxu1  ;;  %v719_v61 = vadd.f32 %v3225_v26, %v718_v42  ;;  %2597 = vmatprep.mubr.msk.f32.mxu1 %vm417_vm0, %v883_v36  ;;  %v3392_v54 = vld [vmem:[%s3557_s6] ss:$0 sm:$0xff] }
 0x1b5   :  { %v3319_v62 = vadd.f32 %v3225_v26, %v838_v52  ;;  %2598 = vmatmul.mubr.msk.f32.gmra.mrb[40].mxu1 %vm417_vm0, %v884_v57  ;;  %v886_v5 = vmax.f32 %v724_v58, 0.0 }
 0x1b6   :  { %v885_v34 = vmax.f32 %v719_v61, 0.0  ;;  %v2525_v6 = vpop.f32.mrb[20].mxu0  ;;  %v910_v4 = vmax.f32 %v3314_v47, 0.0 }
 0x1b7   :  { %v2561_v63 = vpop.f32.mrb[20].mxu1  ;;  %v734_v35 = vadd.f32 %v2525_v6, %v3225_v26  ;;  %v728_v0 = vpop.f32.mrb[21].mxu0 }
 0x1b8   :  { %v3324_v16 = vadd.f32 %v2561_v63, %v3225_v26  ;;  %v848_v1 = vpop.f32.mrb[21].mxu1  ;;  %v729_v38 = vadd.f32 %v3225_v26, %v728_v0  ;;  %2600 = vmatprep.mubr.msk.f32.mxu1 %vm417_vm0, %v885_v34 }
 0x1b9   :  { %v3329_v15 = vadd.f32 %v3225_v26, %v848_v1  ;;  %2601 = vmatmul.mubr.msk.f32.gmra.mrb[42].mxu1 %vm417_vm0, %v886_v5  ;;  %v888_v2 = vmax.f32 %v734_v35, 0.0 }
 0x1ba   :  { %v887_v27 = vmax.f32 %v729_v38, 0.0  ;;  %v2528_v50 = vpop.f32.mrb[22].mxu0  ;;  %v912_v18 = vmax.f32 %v3324_v16, 0.0 }
 0x1bb   :  { %v2564_v49 = vpop.f32.mrb[22].mxu1  ;;  %v744_v30 = vadd.f32 %v2528_v50, %v3225_v26  ;;  %v738_v3 = vpop.f32.mrb[23].mxu0  ;;  %v911_v33 = vmax.f32 %v3329_v15, 0.0 }
 0x1bc   :  { %v864_v7 = vadd.f32 %v2564_v49, %v3225_v26  ;;  %v858_v8 = vpop.f32.mrb[23].mxu1  ;;  %v739_v29 = vadd.f32 %v3225_v26, %v738_v3  ;;  %2603 = vmatprep.mubr.msk.f32.mxu1 %vm417_vm0, %v887_v27 }
 0x1bd   :  { %v859_v12 = vadd.f32 %v3225_v26, %v858_v8  ;;  %2604 = vmatmul.mubr.msk.f32.gmra.mrb[44].mxu1 %vm417_vm0, %v888_v2  ;;  %v890_v17 = vmax.f32 %v744_v30, 0.0  ;;  %v897_v26 = vmax.f32 %v3260_v53, 0.0  ;;  %v903_v53 = vmax.f32 %v3289_v9, 0.0 }
 0x1be   :  { %v889_v13 = vmax.f32 %v739_v29, 0.0  ;;  %v909_v9 = vmax.f32 %v3319_v62, 0.0  ;;  %v914_v51 = vmax.f32 %v864_v7, 0.0 }
 0x1bf   :  { %v913_v46 = vmax.f32 %v859_v12, 0.0 }
 0x1c0   :  { %2606 = vmatprep.mubr.msk.f32.mxu1 %vm417_vm0, %v889_v13 }
 0x1c1   :  { %2607 = vmatmul.mubr.msk.f32.gmra.mrb[46].mxu1 %vm417_vm0, %v890_v17 }
 0x1c2   :  { %2609 = vmatprep.mubr.msk.f32.mxu1 %vm417_vm0, %v891_v20 }
 0x1c5   :  { %2610 = vmatmul.mubr.msk.f32.gmra.mrb[48].mxu1 %vm417_vm0, %v892_v31 }
 0x1c6   :  { %2612 = vmatprep.mubr.msk.f32.mxu1 %vm417_vm0, %v893_v40 }
 0x1c9   :  { %2613 = vmatmul.mubr.msk.f32.gmra.mrb[50].mxu1 %vm417_vm0, %v894_v43 }
 0x1ca   :  { %2615 = vmatprep.mubr.msk.f32.mxu1 %vm417_vm0, %v895_v10 }
 0x1cd   :  { %2616 = vmatmul.mubr.msk.f32.gmra.mrb[52].mxu1 %vm417_vm0, %v896_v23 }
 0x1ce   :  { %2618 = vmatprep.mubr.msk.f32.mxu1 %vm417_vm0, %v897_v26 }
 0x1d1   :  { %2619 = vmatmul.mubr.msk.f32.gmra.mrb[54].mxu1 %vm417_vm0, %v898_v45 }
 0x1d2   :  { %2621 = vmatprep.mubr.msk.f32.mxu1 %vm417_vm0, %v899_v19 }
 0x1d5   :  { %2622 = vmatmul.mubr.msk.f32.gmra.mrb[56].mxu1 %vm417_vm0, %v900_v22 }
 0x1d6   :  { %2624 = vmatprep.mubr.msk.f32.mxu1 %vm417_vm0, %v901_v37 }
 0x1d9   :  { %2625 = vmatmul.mubr.msk.f32.gmra.mrb[58].mxu1 %vm417_vm0, %v902_v48 }
 0x1da   :  { %2627 = vmatprep.mubr.msk.f32.mxu1 %vm417_vm0, %v903_v53 }
 0x1dd   :  { %2628 = vmatmul.mubr.msk.f32.gmra.mrb[60].mxu1 %vm417_vm0, %v904_v44 }
 0x1de   :  { %2630 = vmatprep.mubr.msk.f32.mxu1 %vm417_vm0, %v905_v59 }
 0x1e1   :  { %2631 = vmatmul.mubr.msk.f32.gmra.mrb[62].mxu1 %vm417_vm0, %v906_v60 }
 0x1e2   :  { %2633 = vmatprep.mubr.msk.f32.mxu1 %vm417_vm0, %v907_v39 }
 0x1e5   :  { %2634 = vmatmul.mubr.msk.f32.gmra.mrb[64].mxu1 %vm417_vm0, %v908_v32 }
 0x1e6   :  { %2636 = vmatprep.mubr.msk.f32.mxu1 %vm417_vm0, %v909_v9 }
 0x1e9   :  { %2637 = vmatmul.mubr.msk.f32.gmra.mrb[66].mxu1 %vm417_vm0, %v910_v4 }
 0x1ea   :  { %2639 = vmatprep.mubr.msk.f32.mxu1 %vm417_vm0, %v911_v33 }
 0x1ed   :  { %2640 = vmatmul.mubr.msk.f32.gmra.mrb[68].mxu1 %vm417_vm0, %v912_v18 }
 0x1ee   :  { %2642 = vmatprep.mubr.msk.f32.mxu1 %vm417_vm0, %v913_v46 }
 0x1f1   :  { %2643 = vmatmul.mubr.msk.f32.gmra.mrb[70].mxu1 %vm417_vm0, %v914_v51 }
 0x25c   :  { %v2575_v55 = vpop.f32.mrb[24].mxu1 }
 0x25d   :  { %v1142_v56 = vadd.f32 %v2575_v55, %v3392_v54  ;;  %v1136_v28 = vpop.f32.mrb[25].mxu1 }
 0x25e   :  { %v1137_v36 = vadd.f32 %v3392_v54, %v1136_v28 }
 0x25f   :  { %v1376_v41 = vmax.f32 %v1142_v56, 0.0 }
 0x260   :  { %v1375_v24 = vmax.f32 %v1137_v36, 0.0 }
 0x262   :  { %2653 = vmatprep.mubr.msk.f32.mxu0 %vm417_vm0, %v1375_v24 }
 0x263   :  { %2654 = vmatmul.mubr.msk.f32.vlgmr.msra.gmra.mrb[24].mxu0 %vm417_vm0, %v1376_v41 }
 0x264   :  { %v2578_v57 = vpop.f32.mrb[26].mxu1 }
 0x265   :  { %v1152_v58 = vadd.f32 %v2578_v57, %v3392_v54  ;;  %v1146_v42 = vpop.f32.mrb[27].mxu1 }
 0x266   :  { %v1147_v47 = vadd.f32 %v3392_v54, %v1146_v42 }
 0x267   :  { %v1378_v61 = vmax.f32 %v1152_v58, 0.0 }
 0x268   :  { %v1377_v52 = vmax.f32 %v1147_v47, 0.0 }
 0x26a   :  { %2656 = vmatprep.mubr.msk.f32.mxu0 %vm417_vm0, %v1377_v52 }
 0x26b   :  { %2657 = vmatmul.mubr.msk.f32.gmra.mrb[26].mxu0 %vm417_vm0, %v1378_v61 }
 0x26c   :  { %v2581_v62 = vpop.f32.mrb[28].mxu1 }
 0x26d   :  { %v1162_v34 = vadd.f32 %v2581_v62, %v3392_v54  ;;  %v1156_v6 = vpop.f32.mrb[29].mxu1 }
 0x26e   :  { %v1157_v63 = vadd.f32 %v3392_v54, %v1156_v6 }
 0x26f   :  { %v1380_v35 = vmax.f32 %v1162_v34, 0.0 }
 0x270   :  { %v1379_v5 = vmax.f32 %v1157_v63, 0.0 }
 0x272   :  { %2659 = vmatprep.mubr.msk.f32.mxu0 %vm417_vm0, %v1379_v5 }
 0x273   :  { %2660 = vmatmul.mubr.msk.f32.gmra.mrb[28].mxu0 %vm417_vm0, %v1380_v35 }
 0x274   :  { %v2584_v0 = vpop.f32.mrb[30].mxu1 }
 0x275   :  { %v1172_v16 = vadd.f32 %v2584_v0, %v3392_v54  ;;  %v1166_v1 = vpop.f32.mrb[31].mxu1 }
 0x276   :  { %v1167_v38 = vadd.f32 %v3392_v54, %v1166_v1 }
 0x277   :  { %v1382_v50 = vmax.f32 %v1172_v16, 0.0 }
 0x278   :  { %v1381_v15 = vmax.f32 %v1167_v38, 0.0  ;;  %v2587_v27 = vpop.f32.mrb[32].mxu1 }
 0x279   :  { %v1182_v49 = vadd.f32 %v2587_v27, %v3392_v54  ;;  %v1176_v2 = vpop.f32.mrb[33].mxu1 }
 0x27a   :  { %v1177_v30 = vadd.f32 %v3392_v54, %v1176_v2  ;;  %2662 = vmatprep.mubr.msk.f32.mxu0 %vm417_vm0, %v1381_v15 }
 0x27b   :  { %2663 = vmatmul.mubr.msk.f32.gmra.mrb[30].mxu0 %vm417_vm0, %v1382_v50  ;;  %v1384_v8 = vmax.f32 %v1182_v49, 0.0 }
 0x27c   :  { %v1383_v3 = vmax.f32 %v1177_v30, 0.0  ;;  %v2590_v7 = vpop.f32.mrb[34].mxu1 }
 0x27d   :  { %v1192_v11 = vadd.f32 %v2590_v7, %v3392_v54  ;;  %v1186_v29 = vpop.f32.mrb[35].mxu1 }
 0x27e   :  { %v1187_v12 = vadd.f32 %v3392_v54, %v1186_v29  ;;  %2665 = vmatprep.mubr.msk.f32.mxu0 %vm417_vm0, %v1383_v3 }
 0x27f   :  { %2666 = vmatmul.mubr.msk.f32.gmra.mrb[32].mxu0 %vm417_vm0, %v1384_v8  ;;  %v1386_v17 = vmax.f32 %v1192_v11, 0.0 }
 0x280   :  { %v1385_v13 = vmax.f32 %v1187_v12, 0.0  ;;  %v2593_v14 = vpop.f32.mrb[36].mxu1 }
 0x281   :  { %v1202_v20 = vadd.f32 %v2593_v14, %v3392_v54  ;;  %v1196_v25 = vpop.f32.mrb[37].mxu1 }
 0x282   :  { %v1197_v31 = vadd.f32 %v3392_v54, %v1196_v25  ;;  %2668 = vmatprep.mubr.msk.f32.mxu0 %vm417_vm0, %v1385_v13 }
 0x283   :  { %2669 = vmatmul.mubr.msk.f32.gmra.mrb[34].mxu0 %vm417_vm0, %v1386_v17  ;;  %v1388_v10 = vmax.f32 %v1202_v20, 0.0 }
 0x284   :  { %v1387_v40 = vmax.f32 %v1197_v31, 0.0  ;;  %v2596_v43 = vpop.f32.mrb[38].mxu1 }
 0x285   :  { %v1212_v26 = vadd.f32 %v2596_v43, %v3392_v54  ;;  %v1206_v23 = vpop.f32.mrb[39].mxu1 }
 0x286   :  { %v1207_v45 = vadd.f32 %v3392_v54, %v1206_v23  ;;  %2671 = vmatprep.mubr.msk.f32.mxu0 %vm417_vm0, %v1387_v40 }
 0x287   :  { %2672 = vmatmul.mubr.msk.f32.gmra.mrb[36].mxu0 %vm417_vm0, %v1388_v10  ;;  %v1390_v37 = vmax.f32 %v1212_v26, 0.0 }
 0x288   :  { %v1389_v19 = vmax.f32 %v1207_v45, 0.0  ;;  %v2599_v22 = vpop.f32.mrb[40].mxu1 }
 0x289   :  { %v1222_v48 = vadd.f32 %v2599_v22, %v3392_v54  ;;  %v1216_v53 = vpop.f32.mrb[41].mxu1 }
 0x28a   :  { %v1217_v44 = vadd.f32 %v3392_v54, %v1216_v53  ;;  %2674 = vmatprep.mubr.msk.f32.mxu0 %vm417_vm0, %v1389_v19 }
 0x28b   :  { %2675 = vmatmul.mubr.msk.f32.gmra.mrb[38].mxu0 %vm417_vm0, %v1390_v37  ;;  %v1392_v39 = vmax.f32 %v1222_v48, 0.0 }
 0x28c   :  { %v1391_v59 = vmax.f32 %v1217_v44, 0.0  ;;  %v2602_v60 = vpop.f32.mrb[42].mxu1 }
 0x28d   :  { %v1232_v32 = vadd.f32 %v2602_v60, %v3392_v54  ;;  %v1226_v9 = vpop.f32.mrb[43].mxu1 }
 0x28e   :  { %v1227_v4 = vadd.f32 %v3392_v54, %v1226_v9  ;;  %2677 = vmatprep.mubr.msk.f32.mxu0 %vm417_vm0, %v1391_v59 }
 0x28f   :  { %2678 = vmatmul.mubr.msk.f32.gmra.mrb[40].mxu0 %vm417_vm0, %v1392_v39  ;;  %v1394_v46 = vmax.f32 %v1232_v32, 0.0 }
 0x290   :  { %v1393_v33 = vmax.f32 %v1227_v4, 0.0  ;;  %v2605_v18 = vpop.f32.mrb[44].mxu1 }
 0x291   :  { %v1242_v51 = vadd.f32 %v2605_v18, %v3392_v54  ;;  %v1236_v55 = vpop.f32.mrb[45].mxu1 }
 0x292   :  { %v1237_v56 = vadd.f32 %v3392_v54, %v1236_v55  ;;  %2680 = vmatprep.mubr.msk.f32.mxu0 %vm417_vm0, %v1393_v33 }
 0x293   :  { %2681 = vmatmul.mubr.msk.f32.gmra.mrb[42].mxu0 %vm417_vm0, %v1394_v46  ;;  %v1396_v24 = vmax.f32 %v1242_v51, 0.0 }
 0x294   :  { %v1395_v28 = vmax.f32 %v1237_v56, 0.0  ;;  %v2608_v36 = vpop.f32.mrb[46].mxu1 }
 0x295   :  { %v1252_v41 = vadd.f32 %v2608_v36, %v3392_v54  ;;  %v1246_v57 = vpop.f32.mrb[47].mxu1 }
 0x296   :  { %v1247_v58 = vadd.f32 %v3392_v54, %v1246_v57  ;;  %2683 = vmatprep.mubr.msk.f32.mxu0 %vm417_vm0, %v1395_v28 }
 0x297   :  { %2684 = vmatmul.mubr.msk.f32.gmra.mrb[44].mxu0 %vm417_vm0, %v1396_v24  ;;  %v1398_v52 = vmax.f32 %v1252_v41, 0.0 }
 0x298   :  { %v1397_v42 = vmax.f32 %v1247_v58, 0.0  ;;  %v2611_v47 = vpop.f32.mrb[48].mxu1 }
 0x299   :  { %v1262_v61 = vadd.f32 %v2611_v47, %v3392_v54  ;;  %v1256_v62 = vpop.f32.mrb[49].mxu1 }
 0x29a   :  { %v1257_v34 = vadd.f32 %v3392_v54, %v1256_v62  ;;  %2686 = vmatprep.mubr.msk.f32.mxu0 %vm417_vm0, %v1397_v42 }
 0x29b   :  { %2687 = vmatmul.mubr.msk.f32.gmra.mrb[46].mxu0 %vm417_vm0, %v1398_v52  ;;  %v1400_v5 = vmax.f32 %v1262_v61, 0.0 }
 0x29c   :  { %v1399_v6 = vmax.f32 %v1257_v34, 0.0  ;;  %v2614_v63 = vpop.f32.mrb[50].mxu1 }
 0x29d   :  { %v1272_v35 = vadd.f32 %v2614_v63, %v3392_v54  ;;  %v1266_v0 = vpop.f32.mrb[51].mxu1 }
 0x29e   :  { %v1267_v16 = vadd.f32 %v3392_v54, %v1266_v0  ;;  %2689 = vmatprep.mubr.msk.f32.mxu0 %vm417_vm0, %v1399_v6 }
 0x29f   :  { %2690 = vmatmul.mubr.msk.f32.gmra.mrb[48].mxu0 %vm417_vm0, %v1400_v5  ;;  %v1402_v15 = vmax.f32 %v1272_v35, 0.0 }
 0x2a0   :  { %v1401_v1 = vmax.f32 %v1267_v16, 0.0  ;;  %v2617_v38 = vpop.f32.mrb[52].mxu1 }
 0x2a1   :  { %v1282_v27 = vadd.f32 %v2617_v38, %v3392_v54  ;;  %v1276_v50 = vpop.f32.mrb[53].mxu1 }
 0x2a2   :  { %v1277_v49 = vadd.f32 %v3392_v54, %v1276_v50  ;;  %2692 = vmatprep.mubr.msk.f32.mxu0 %vm417_vm0, %v1401_v1  ;;  %v3493_v1 = vld [vmem:[%s3559_s8] ss:$0 sm:$0xff]  ;;  %s2818_s8 = smov 64  }
 0x2a3   :  { %2693 = vmatmul.mubr.msk.f32.gmra.mrb[50].mxu0 %vm417_vm0, %v1402_v15  ;;  %v1404_v3 = vmax.f32 %v1282_v27, 0.0 }
 0x2a4   :  { %v1403_v2 = vmax.f32 %v1277_v49, 0.0  ;;  %v2620_v30 = vpop.f32.mrb[54].mxu1 }
 0x2a5   :  { %v1292_v7 = vadd.f32 %v2620_v30, %v3392_v54  ;;  %v1286_v8 = vpop.f32.mrb[55].mxu1 }
 0x2a6   :  { %v1287_v11 = vadd.f32 %v3392_v54, %v1286_v8  ;;  %2695 = vmatprep.mubr.msk.f32.mxu0 %vm417_vm0, %v1403_v2 }
 0x2a7   :  { %2696 = vmatmul.mubr.msk.f32.gmra.mrb[52].mxu0 %vm417_vm0, %v1404_v3  ;;  %v1406_v13 = vmax.f32 %v1292_v7, 0.0 }
 0x2a8   :  { %v1405_v29 = vmax.f32 %v1287_v11, 0.0  ;;  %v2623_v12 = vpop.f32.mrb[56].mxu1 }
 0x2a9   :  { %v1302_v14 = vadd.f32 %v2623_v12, %v3392_v54  ;;  %v1296_v17 = vpop.f32.mrb[57].mxu1 }
 0x2aa   :  { %v1297_v20 = vadd.f32 %v3392_v54, %v1296_v17  ;;  %2698 = vmatprep.mubr.msk.f32.mxu0 %vm417_vm0, %v1405_v29 }
 0x2ab   :  { %2699 = vmatmul.mubr.msk.f32.gmra.mrb[54].mxu0 %vm417_vm0, %v1406_v13  ;;  %v1408_v40 = vmax.f32 %v1302_v14, 0.0 }
 0x2ac   :  { %v1407_v25 = vmax.f32 %v1297_v20, 0.0  ;;  %v2626_v31 = vpop.f32.mrb[58].mxu1 }
 0x2ad   :  { %v1312_v43 = vadd.f32 %v2626_v31, %v3392_v54  ;;  %v1306_v10 = vpop.f32.mrb[59].mxu1 }
 0x2ae   :  { %v1307_v26 = vadd.f32 %v3392_v54, %v1306_v10  ;;  %2701 = vmatprep.mubr.msk.f32.mxu0 %vm417_vm0, %v1407_v25 }
 0x2af   :  { %2702 = vmatmul.mubr.msk.f32.gmra.mrb[56].mxu0 %vm417_vm0, %v1408_v40  ;;  %v1410_v19 = vmax.f32 %v1312_v43, 0.0 }
 0x2b0   :  { %v1409_v23 = vmax.f32 %v1307_v26, 0.0  ;;  %v2629_v45 = vpop.f32.mrb[60].mxu1 }
 0x2b1   :  { %v1322_v22 = vadd.f32 %v2629_v45, %v3392_v54  ;;  %v1316_v37 = vpop.f32.mrb[61].mxu1 }
 0x2b2   :  { %v1317_v48 = vadd.f32 %v3392_v54, %v1316_v37  ;;  %2704 = vmatprep.mubr.msk.f32.mxu0 %vm417_vm0, %v1409_v23 }
 0x2b3   :  { %2705 = vmatmul.mubr.msk.f32.gmra.mrb[58].mxu0 %vm417_vm0, %v1410_v19  ;;  %v1412_v59 = vmax.f32 %v1322_v22, 0.0 }
 0x2b4   :  { %v1411_v53 = vmax.f32 %v1317_v48, 0.0  ;;  %v2632_v44 = vpop.f32.mrb[62].mxu1 }
 0x2b5   :  { %v1332_v60 = vadd.f32 %v2632_v44, %v3392_v54  ;;  %v1326_v39 = vpop.f32.mrb[63].mxu1 }
 0x2b6   :  { %v1327_v32 = vadd.f32 %v3392_v54, %v1326_v39  ;;  %2707 = vmatprep.mubr.msk.f32.mxu0 %vm417_vm0, %v1411_v53 }
 0x2b7   :  { %2708 = vmatmul.mubr.msk.f32.gmra.mrb[60].mxu0 %vm417_vm0, %v1412_v59  ;;  %v1414_v33 = vmax.f32 %v1332_v60, 0.0 }
 0x2b8   :  { %v1413_v9 = vmax.f32 %v1327_v32, 0.0  ;;  %v2635_v4 = vpop.f32.mrb[64].mxu1 }
 0x2b9   :  { %v1342_v18 = vadd.f32 %v2635_v4, %v3392_v54  ;;  %v1336_v46 = vpop.f32.mrb[65].mxu1 }
 0x2ba   :  { %v1337_v51 = vadd.f32 %v3392_v54, %v1336_v46  ;;  %2710 = vmatprep.mubr.msk.f32.mxu0 %vm417_vm0, %v1413_v9 }
 0x2bb   :  { %2711 = vmatmul.mubr.msk.f32.gmra.mrb[62].mxu0 %vm417_vm0, %v1414_v33  ;;  %v1416_v28 = vmax.f32 %v1342_v18, 0.0 }
 0x2bc   :  { %v1415_v55 = vmax.f32 %v1337_v51, 0.0  ;;  %v2638_v56 = vpop.f32.mrb[66].mxu1 }
 0x2bd   :  { %v1352_v36 = vadd.f32 %v2638_v56, %v3392_v54  ;;  %v1346_v24 = vpop.f32.mrb[67].mxu1 }
 0x2be   :  { %v1347_v41 = vadd.f32 %v3392_v54, %v1346_v24  ;;  %2713 = vmatprep.mubr.msk.f32.mxu0 %vm417_vm0, %v1415_v55 }
 0x2bf   :  { %2714 = vmatmul.mubr.msk.f32.gmra.mrb[64].mxu0 %vm417_vm0, %v1416_v28  ;;  %v1418_v42 = vmax.f32 %v1352_v36, 0.0 }
 0x2c0   :  { %v1417_v57 = vmax.f32 %v1347_v41, 0.0  ;;  %v2641_v58 = vpop.f32.mrb[68].mxu1 }
 0x2c1   :  { %v1362_v47 = vadd.f32 %v2641_v58, %v3392_v54  ;;  %v1356_v52 = vpop.f32.mrb[69].mxu1 }
 0x2c2   :  { %v1357_v61 = vadd.f32 %v3392_v54, %v1356_v52  ;;  %2716 = vmatprep.mubr.msk.f32.mxu0 %vm417_vm0, %v1417_v57 }
 0x2c3   :  { %2717 = vmatmul.mubr.msk.f32.gmra.mrb[66].mxu0 %vm417_vm0, %v1418_v42  ;;  %v1420_v6 = vmax.f32 %v1362_v47, 0.0 }
 0x2c4   :  { %v1419_v62 = vmax.f32 %v1357_v61, 0.0  ;;  %v2644_v34 = vpop.f32.mrb[70].mxu1 }
 0x2c5   :  { %v1372_v63 = vadd.f32 %v2644_v34, %v3392_v54  ;;  %v1366_v5 = vpop.f32.mrb[71].mxu1 }
 0x2c6   :  { %v1367_v35 = vadd.f32 %v3392_v54, %v1366_v5  ;;  %2719 = vmatprep.mubr.msk.f32.mxu0 %vm417_vm0, %v1419_v62 }
 0x2c7   :  { %2720 = vmatmul.mubr.msk.f32.gmra.mrb[68].mxu0 %vm417_vm0, %v1420_v6  ;;  %v1422_v16 = vmax.f32 %v1372_v63, 0.0 }
 0x2c8   :  { %v1421_v0 = vmax.f32 %v1367_v35, 0.0 }
 0x2ca   :  { %2722 = vmatprep.mubr.msk.f32.mxu0 %vm417_vm0, %v1421_v0 }
 0x2cb   :  { %2723 = vmatmul.mubr.msk.f32.gmra.mrb[70].mxu0 %vm417_vm0, %v1422_v16 }
 0x336   :  { %v2655_v38 = vpop.f32.mrb[24].mxu0 }
 0x337   :  { %v1644_v15 = vpop.f32.mrb[25].mxu0  ;;  %v1650_v54 = vadd.f32 %v2655_v38, %v3493_v1 }
 0x338   :  { %v1645_v27 = vadd.f32 %v3493_v1, %v1644_v15 }
 0x33a   :  { %1883 = vxpose.xlu0.b32.start [1/8] (short) (narrow) %v1645_v27, 8 }
 0x33e   :  { %v2658_v50 = vpop.f32.mrb[26].mxu0  ;;  %1884 = vxpose.xlu0.b32.cont [2/8] (short) (narrow) %v1650_v54, 8 }
 0x33f   :  { %v1654_v49 = vpop.f32.mrb[27].mxu0  ;;  %v1660_v30 = vadd.f32 %v2658_v50, %v3493_v1 }
 0x340   :  { %v1655_v2 = vadd.f32 %v3493_v1, %v1654_v49 }
 0x342   :  { %1885 = vxpose.xlu0.b32.cont [3/8] (short) (narrow) %v1655_v2, 8 }
 0x346   :  { %v2661_v3 = vpop.f32.mrb[28].mxu0  ;;  %1886 = vxpose.xlu0.b32.cont [4/8] (short) (narrow) %v1660_v30, 8 }
 0x347   :  { %v1664_v7 = vpop.f32.mrb[29].mxu0  ;;  %v1670_v11 = vadd.f32 %v2661_v3, %v3493_v1 }
 0x348   :  { %v1665_v8 = vadd.f32 %v3493_v1, %v1664_v7 }
 0x34a   :  { %1887 = vxpose.xlu0.b32.cont [5/8] (short) (narrow) %v1665_v8, 8 }
 0x34e   :  { %1888 = vxpose.xlu0.b32.cont [6/8] (short) (narrow) %v1670_v11, 8  ;;  %v2664_v29 = vpop.f32.mrb[30].mxu0 }
 0x34f   :  { %v1674_v12 = vpop.f32.mrb[31].mxu0  ;;  %v1680_v20 = vadd.f32 %v2664_v29, %v3493_v1 }
 0x350   :  { %v1675_v13 = vadd.f32 %v3493_v1, %v1674_v12 }
 0x352   :  { %v2667_v14 = vpop.f32.mrb[32].mxu0  ;;  %1889 = vxpose.xlu0.b32.cont [7/8] (short) (narrow) %v1675_v13, 8 }
 0x353   :  { %v1684_v17 = vpop.f32.mrb[33].mxu0  ;;  %v1690_v43 = vadd.f32 %v2667_v14, %v3493_v1 }
 0x354   :  { %v1685_v25 = vadd.f32 %v3493_v1, %v1684_v17 }
 0x356   :  { %v2670_v31 = vpop.f32.mrb[34].mxu0  ;;  %1915 = vxpose.xlu1.b32.start [1/8] (short) (narrow) %v1685_v25, 8  ;;  %1890 = vxpose.xlu0.b32.end [8/8] (short) (narrow) %v1680_v20, 8 }
 0x357   :  { %v1694_v40 = vpop.f32.mrb[35].mxu0  ;;  %v1700_v22 = vadd.f32 %v2670_v31, %v3493_v1 }
 0x358   :  { %v1695_v23 = vadd.f32 %v3493_v1, %v1694_v40 }
 0x35a   :  { %v2673_v10 = vpop.f32.mrb[36].mxu0  ;;  %1916 = vxpose.xlu1.b32.cont [2/8] (short) (narrow) %v1690_v43, 8 }
 0x35b   :  { %v1704_v26 = vpop.f32.mrb[37].mxu0  ;;  %v1710_v39 = vadd.f32 %v2673_v10, %v3493_v1 }
 0x35c   :  { %v1705_v53 = vadd.f32 %v3493_v1, %v1704_v26 }
 0x35e   :  { %v2676_v45 = vpop.f32.mrb[38].mxu0  ;;  %1917 = vxpose.xlu1.b32.cont [3/8] (short) (narrow) %v1695_v23, 8 }
 0x35f   :  { %v1714_v19 = vpop.f32.mrb[39].mxu0  ;;  %v1720_v55 = vadd.f32 %v2676_v45, %v3493_v1 }
 0x360   :  { %v1715_v33 = vadd.f32 %v3493_v1, %v1714_v19 }
 0x362   :  { %v2679_v37 = vpop.f32.mrb[40].mxu0  ;;  %1918 = vxpose.xlu1.b32.cont [4/8] (short) (narrow) %v1700_v22, 8 }
 0x363   :  { %v1724_v48 = vpop.f32.mrb[41].mxu0  ;;  %v1730_v32 = vadd.f32 %v2679_v37, %v3493_v1 }
 0x364   :  { %v1725_v44 = vadd.f32 %v3493_v1, %v1724_v48 }
 0x366   :  { %v2682_v59 = vpop.f32.mrb[42].mxu0  ;;  %1919 = vxpose.xlu1.b32.cont [5/8] (short) (narrow) %v1705_v53, 8  ;;  %1947 = vxpose.xlu0.b32.start [1/8] (short) (narrow) %v1725_v44, 8 }
 0x367   :  { %v1734_v60 = vpop.f32.mrb[43].mxu0  ;;  %v1740_v56 = vadd.f32 %v2682_v59, %v3493_v1 }
 0x368   :  { %v1735_v18 = vadd.f32 %v3493_v1, %v1734_v60 }
 0x36a   :  { %v2685_v9 = vpop.f32.mrb[44].mxu0  ;;  %1920 = vxpose.xlu1.b32.cont [6/8] (short) (narrow) %v1710_v39, 8  ;;  %1948 = vxpose.xlu0.b32.cont [2/8] (short) (narrow) %v1730_v32, 8  ;;  %v2815_v39 = vmov 1983009808  }
 0x36b   :  { %v1744_v4 = vpop.f32.mrb[45].mxu0  ;;  %v1750_v42 = vadd.f32 %v2685_v9, %v3493_v1  ;;  %v2077_v32 = vunpack.c.l.s4 %v2815_v39 }
 0x36c   :  { %v1745_v24 = vadd.f32 %v3493_v1, %v1744_v4 }
 0x36d   :  { %v2078_v9 = vunpack.c.0.s8 %v2077_v32 }
 0x36e   :  { %v2688_v46 = vpop.f32.mrb[46].mxu0  ;;  %1921 = vxpose.xlu1.b32.cont [7/8] (short) (narrow) %v1715_v33, 8  ;;  %1949 = vxpose.xlu0.b32.cont [3/8] (short) (narrow) %v1735_v18, 8  ;;  %v2816_v33 = vmov 1934713408  }
 0x36f   :  { %v1754_v51 = vpop.f32.mrb[47].mxu0  ;;  %v1760_v5 = vadd.f32 %v2688_v46, %v3493_v1  ;;  %v2093_v18 = vunpack.c.l.s4 %v2816_v33  ;;  %v2081_v46 = vsub.s32 %v2078_v9, %v2917_v21 }
 0x370   :  { %v1755_v62 = vadd.f32 %v3493_v1, %v1754_v51 }
 0x372   :  { %v2691_v28 = vpop.f32.mrb[48].mxu0  ;;  %1922 = vxpose.xlu1.b32.end [8/8] (short) (narrow) %v1720_v55, 8  ;;  %1950 = vxpose.xlu0.b32.cont [4/8] (short) (narrow) %v1740_v56, 8  ;;  %v2094_v55 = vunpack.c.0.s8 %v2093_v18 }
 0x373   :  { %v1764_v36 = vpop.f32.mrb[49].mxu0  ;;  %v1770_v47 = vadd.f32 %v2691_v28, %v3493_v1 }
 0x374   :  { %v1765_v41 = vadd.f32 %v3493_v1, %v1764_v36 }
 0x376   :  { %v2694_v57 = vpop.f32.mrb[50].mxu0  ;;  %1979 = vxpose.xlu1.b32.start [1/8] (short) (narrow) %v1765_v41, 8  ;;  %1951 = vxpose.xlu0.b32.cont [5/8] (short) (narrow) %v1745_v24, 8  ;;  %v2097_v41 = vsub.s32 %v2094_v55, %v2917_v21 }
 0x377   :  { %v1774_v58 = vpop.f32.mrb[51].mxu0  ;;  %v1780_v35 = vadd.f32 %v2694_v57, %v3493_v1 }
 0x378   :  { %v1775_v34 = vadd.f32 %v3493_v1, %v1774_v58 }
 0x37a   :  { %v2697_v52 = vpop.f32.mrb[52].mxu0  ;;  %1980 = vxpose.xlu1.b32.cont [2/8] (short) (narrow) %v1770_v47, 8  ;;  %1952 = vxpose.xlu0.b32.cont [6/8] (short) (narrow) %v1750_v42, 8  ;;  %v2817_v47 = vmov 0.0  }
 0x37b   :  { %v1784_v61 = vpop.f32.mrb[53].mxu0  ;;  %v1790_v54 = vadd.f32 %v2697_v52, %v3493_v1 }
 0x37c   :  { %v1785_v38 = vadd.f32 %v3493_v1, %v1784_v61 }
 0x37e   :  { %v2700_v6 = vpop.f32.mrb[54].mxu0  ;;  %1981 = vxpose.xlu1.b32.cont [3/8] (short) (narrow) %v1775_v34, 8  ;;  %1953 = vxpose.xlu0.b32.cont [7/8] (short) (narrow) %v1755_v62, 8 }
 0x37f   :  { %v1794_v63 = vpop.f32.mrb[55].mxu0  ;;  %v1800_v7 = vadd.f32 %v2700_v6, %v3493_v1 }
 0x380   :  { %v1795_v2 = vadd.f32 %v3493_v1, %v1794_v63 }
 0x382   :  { %v2703_v0 = vpop.f32.mrb[56].mxu0  ;;  %1982 = vxpose.xlu1.b32.cont [4/8] (short) (narrow) %v1780_v35, 8  ;;  %1954 = vxpose.xlu0.b32.end [8/8] (short) (narrow) %v1760_v5, 8 }
 0x383   :  { %v1804_v16 = vpop.f32.mrb[57].mxu0  ;;  %v1810_v17 = vadd.f32 %v2703_v0, %v3493_v1 }
 0x384   :  { %v1805_v29 = vadd.f32 %v3493_v1, %v1804_v16 }
 0x386   :  { %v2706_v15 = vpop.f32.mrb[58].mxu0  ;;  %1983 = vxpose.xlu1.b32.cont [5/8] (short) (narrow) %v1785_v38, 8 }
 0x387   :  { %v1814_v27 = vpop.f32.mrb[59].mxu0  ;;  %v1820_v23 = vadd.f32 %v2706_v15, %v3493_v1 }
 0x388   :  { %v1815_v40 = vadd.f32 %v3493_v1, %v1814_v27 }
 0x38a   :  { %v2709_v50 = vpop.f32.mrb[60].mxu0  ;;  %1984 = vxpose.xlu1.b32.cont [6/8] (short) (narrow) %v1790_v54, 8 }
 0x38b   :  { %v1824_v49 = vpop.f32.mrb[61].mxu0  ;;  %v1830_v37 = vadd.f32 %v2709_v50, %v3493_v1 }
 0x38c   :  { %v1825_v19 = vadd.f32 %v3493_v1, %v1824_v49 }
 0x38e   :  { %v2712_v30 = vpop.f32.mrb[62].mxu0  ;;  %1985 = vxpose.xlu1.b32.cont [7/8] (short) (narrow) %v1795_v2, 8 }
 0x38f   :  { %v1834_v3 = vpop.f32.mrb[63].mxu0  ;;  %v1840_v59 = vadd.f32 %v2712_v30, %v3493_v1 }
 0x390   :  { %v1835_v53 = vadd.f32 %v3493_v1, %v1834_v3 }
 0x392   :  { %v2715_v8 = vpop.f32.mrb[64].mxu0  ;;  %1986 = vxpose.xlu1.b32.end [8/8] (short) (narrow) %v1800_v7, 8 }
 0x393   :  { %v1844_v11 = vpop.f32.mrb[65].mxu0  ;;  %v1850_v20 = vadd.f32 %v2715_v8, %v3493_v1 }
 0x394   :  { %v1845_v12 = vadd.f32 %v3493_v1, %v1844_v11 }
 0x396   :  { %v2718_v13 = vpop.f32.mrb[66].mxu0  ;;  %2011 = vxpose.xlu1.b32.start [1/8] (short) (narrow) %v1805_v29, 8  ;;  %2043 = vxpose.xlu0.b32.start [1/8] (short) (narrow) %v1845_v12, 8 }
 0x397   :  { %v1854_v14 = vpop.f32.mrb[67].mxu0  ;;  %v1860_v45 = vadd.f32 %v2718_v13, %v3493_v1 }
 0x398   :  { %v1855_v43 = vadd.f32 %v3493_v1, %v1854_v14 }
 0x39a   :  { %v2721_v25 = vpop.f32.mrb[68].mxu0  ;;  %2012 = vxpose.xlu1.b32.cont [2/8] (short) (narrow) %v1810_v17, 8  ;;  %2044 = vxpose.xlu0.b32.cont [2/8] (short) (narrow) %v1850_v20, 8 }
 0x39b   :  { %v1864_v31 = vpop.f32.mrb[69].mxu0  ;;  %v1870_v48 = vadd.f32 %v2721_v25, %v3493_v1 }
 0x39c   :  { %v1865_v22 = vadd.f32 %v3493_v1, %v1864_v31 }
 0x39e   :  { %v2724_v10 = vpop.f32.mrb[70].mxu0  ;;  %2013 = vxpose.xlu1.b32.cont [3/8] (short) (narrow) %v1815_v40, 8  ;;  %2045 = vxpose.xlu0.b32.cont [3/8] (short) (narrow) %v1855_v43, 8 }
 0x39f   :  { %v1874_v26 = vpop.f32.mrb[71].mxu0  ;;  %v1880_v60 = vadd.f32 %v2724_v10, %v3493_v1 }
 0x3a0   :  { %v1875_v44 = vadd.f32 %v3493_v1, %v1874_v26 }
 0x3a2   :  { %2014 = vxpose.xlu1.b32.cont [4/8] (short) (narrow) %v1820_v23, 8  ;;  %2046 = vxpose.xlu0.b32.cont [4/8] (short) (narrow) %v1860_v45, 8 }
 0x3a6   :  { %2015 = vxpose.xlu1.b32.cont [5/8] (short) (narrow) %v1825_v19, 8  ;;  %2047 = vxpose.xlu0.b32.cont [5/8] (short) (narrow) %v1865_v22, 8 }
 0x3aa   :  { %2016 = vxpose.xlu1.b32.cont [6/8] (short) (narrow) %v1830_v37, 8  ;;  %2048 = vxpose.xlu0.b32.cont [6/8] (short) (narrow) %v1870_v48, 8 }
 0x3ae   :  { %2017 = vxpose.xlu1.b32.cont [7/8] (short) (narrow) %v1835_v53, 8  ;;  %2049 = vxpose.xlu0.b32.cont [7/8] (short) (narrow) %v1875_v44, 8 }
 0x3b2   :  { %2018 = vxpose.xlu1.b32.end [8/8] (short) (narrow) %v1840_v59, 8  ;;  %2050 = vxpose.xlu0.b32.end [8/8] (short) (narrow) %v1880_v60, 8 }
 0x3ba   :  { %v1899_v4 = vpop.trf.xlu0 }
 0x3d6   :  { %v1931_v51 = vpop.trf.xlu1 }
 0x3d7   :  { %v2089_v36 = vrot.slane %v1931_v51, %v2081_v46 }
 0x3e6   :  { %v1963_v56 = vpop.trf.xlu0 }
 0x3e7   :  { %v2075_v28 = vcombine.low %v1899_v4, %v1963_v56 }
 0x3e9   :  { %v2082_v24 = vrot.slane %v2075_v28, %v2081_v46 }
 0x3eb   :  { %v2090_v57 = vcombine.low %v2082_v24, %v2089_v36  ;;  %v2091_v1 = vcombine.high %v2082_v24, %v2089_v36 }
 0x3ed   :  { %v2098_v58 = vrot.slane %v2090_v57, %v2097_v41  ;;  %v2105_v42 = vrot.slane %v2091_v1, %v2097_v41 }
 0x3ef   :  { %v2107_v52 = vcombine.high %v2105_v42, %v2817_v47  ;;  %v2106_v61 = vcombine.high %v2098_v58, %v2817_v47 }
 0x3f1   :  { %2151 = vrot.lane.b32.xlu1 %v2107_v52, %s2818_s8  ;;  %2143 = vrot.lane.b32.xlu0 %v2106_v61, %s2818_s8 }
 0x3f6   :  { %v1995_v62 = vpop.trf.xlu1 }
 0x416   :  { %v2059_v34 = vpop.trf.xlu0  ;;  %v2027_v6 = vpop.trf.xlu1 }
 0x417   :  { %v2108_v63 = vcombine.low %v1995_v62, %v2059_v34  ;;  %v2122_v5 = vrot.slane %v2027_v6, %v2081_v46 }
 0x419   :  { %v2115_v35 = vrot.slane %v2108_v63, %v2081_v46 }
 0x41b   :  { %v2123_v0 = vcombine.low %v2115_v35, %v2122_v5  ;;  %v2124_v16 = vcombine.high %v2115_v35, %v2122_v5 }
 0x41d   :  { %v2131_v38 = vrot.slane %v2123_v0, %v2097_v41  ;;  %v2138_v21 = vrot.slane %v2124_v16, %v2097_v41 }
 0x41f   :  { %v2139_v15 = vcombine.high %v2131_v38, %v2817_v47  ;;  %v2140_v27 = vcombine.high %v2138_v21, %v2817_v47 }
 0x421   :  { %2145 = vrot.lane.b32.xlu1 %v2139_v15, %s2818_s8 }
 0x425   :  { %2153 = vrot.lane.b32.xlu1 %v2140_v27, %s2818_s8 }
 0x463   :  { %v2152_v54 = vpop.permute.xlu1 %2151  ;;  %v2144_v50 = vpop.permute.xlu0 %2143 }
 0x464   :  { %v2160_v49 = vsel %vm2157_vm1, %v2105_v42, %v2152_v54  ;;  %v2158_v2 = vsel %vm2157_vm1, %v2098_v58, %v2144_v50 }
 0x465   :  { %v2166_v30 = vcombine.low %v2158_v2, %v2160_v49 }
 0x467   :  { %2170 = vst [vmem:[%s3560_s9] sm:$0x77] %v2166_v30 }
 0x493   :  { %v2146_v3 = vpop.permute.xlu1 %2145 }
 0x494   :  { %v2159_v8 = vsel %vm2157_vm1, %v2131_v38, %v2146_v3 }
 0x497   :  { %v2154_v7 = vpop.permute.xlu1 %2153 }
 0x498   :  { %v2161_v11 = vsel %vm2157_vm1, %v2138_v21, %v2154_v7 }
 0x499   :  { %v2167_v29 = vcombine.low %v2159_v8, %v2161_v11 }
 0x49b   :  { %2171 = vst [vmem:[%s3560_s9 + $0x8] sm:$0x77] %v2167_v29 }
 0x49c   :  { %2176 = vsyncpa [#allocation3], 1 }
 0x49d   :  { %2177 = vsyncpa [#allocation5], 1 }

</bundles_post_ra>
